<compile_context>
chip_gen: v5e
topology: v5e:2x2
jax: 0.10.0
libtpu: 0.0.40
codegen_flags: <defaults>
</compile_context>

<pallas_src>
import math
import functools

import jax
import jax.numpy as jnp
from jax.experimental import pallas as pl
from jax.experimental.pallas import tpu as pltpu


def mab_kernel(q_ref, k_ref, wq_ref, bq_ref, wkv_ref, bkv_ref, wo_ref, bo_ref,
               o_ref, *scratch, num_heads, dim_V, nq, nk, dim_q, dim_k):
    """One batch-block of the MAB forward.

    Per grid step:
      q_ref : (Bb, nq*dim_q)  or (Bb, nq, dim_q)
      k_ref : (Bb, nk*dim_k)  or (Bb, nk, dim_k)
      o_ref : (Bb, nq*dim_V)  or (Bb, nq, dim_V)
      scratch: optionally one (Bb, nq, dim_V) f32 VMEM slab (fallback combine).
    """
    Bb = q_ref.shape[0]
    ds = dim_V // num_heads
    cdt = wq_ref.dtype          # MXU operand dtype (f32 or bf16); accumulation is f32.

    # ---- projections: row-dense 2-D matmuls over the whole batch block.
    # fc_k / fc_v are fused into one (dim_k, 2*dim_V) matmul; the 1/sqrt(dim_V)
    # softmax scale is already folded into the fc_k half host-side.
    q_in = q_ref[...].reshape(Bb * nq, dim_q)
    k_in = k_ref[...].reshape(Bb * nk, dim_k)
    q = jnp.dot(q_in, wq_ref[...], preferred_element_type=jnp.float32) + bq_ref[...]
    kv = jnp.dot(k_in, wkv_ref[...], preferred_element_type=jnp.float32) + bkv_ref[...]

    q3 = q.reshape(Bb, nq, dim_V)                 # UNscaled (residual path)
    k3 = kv[:, :dim_V].reshape(Bb, nk, dim_V)     # pre-scaled by 1/sqrt(dim_V)
    v3 = kv[:, dim_V:].reshape(Bb, nk, dim_V)

    # ---- per-head attention (heads are few -> static unroll).  The residual is
    # folded into each head output.  Primary path: head outputs stay in
    # registers and are concatenated once along the lane axis (no masked VMEM
    # stores).  Fallback path (scratch provided): per-head slab writes into a
    # VMEM scratch, i.e. the previously validated codegen.
    head_out = []
    for h in range(num_heads):
        sl = slice(h * ds, (h + 1) * ds)
        qh_res = q3[:, :, sl]                     # f32, unscaled -> residual
        qh = qh_res.astype(cdt)
        kh = k3[:, :, sl].astype(cdt)
        vh = v3[:, :, sl].astype(cdt)
        s = jnp.einsum("bqd,bkd->bqk", qh, kh, preferred_element_type=jnp.float32)
        s = s - jnp.max(s, axis=-1, keepdims=True)
        e = jnp.exp(s)
        p = e * pl.reciprocal(jnp.sum(e, axis=-1, keepdims=True), approx=True)
        oh = qh_res + jnp.einsum("bqk,bkd->bqd", p.astype(cdt), vh,
                                 preferred_element_type=jnp.float32)
        if scratch:
            scratch[0][:, :, sl] = oh
        else:
            head_out.append(oh)

    if scratch:
        o3 = scratch[0][...]
    elif num_heads == 1:
        o3 = head_out[0]
    else:
        o3 = jnp.concatenate(head_out, axis=-1)

    # ---- O = O + relu(fc_o(O))
    o = o3.reshape(Bb * nq, dim_V)                # leading-dim merge only (free)
    fc = jnp.dot(o.astype(cdt), wo_ref[...],
                 preferred_element_type=jnp.float32) + bo_ref[...]
    o = o + jnp.maximum(fc, 0.0)

    # TODO(synk): ln=True (LayerNorm ln0/ln1) branches not implemented; module default ln=False.
    # TODO(synk): for very long sequences, additionally tile nq (fori_loop over query
    # chunks) so the (Bb, nq, nk) softmax temporaries stay bounded.
    o_ref[...] = o.astype(o_ref.dtype).reshape(o_ref.shape)


def _choose_block_b(B, *, per_b_bytes, fixed_bytes, budget_bytes, min_grid_steps=1):
    """Largest batch block that (a) divides B, (b) leaves >= min_grid_steps grid
    steps (set 2 on v7x so the parallel axis feeds both TensorCores), (c) is a
    multiple of 8 sublanes or the full batch (the (8,128) tiling rule), and
    (d) keeps fixed_bytes + block_b*per_b_bytes under the VMEM budget."""
    divisors = [d for d in range(B, 0, -1)
                if B % d == 0 and (B // d) >= min_grid_steps]
    if not divisors:
        divisors = [1]
    aligned = [d for d in divisors if d == B or d % 8 == 0]
    if not aligned:                      # exotic batch sizes: accept unaligned
        aligned = divisors
    for d in aligned:
        if fixed_bytes + d * per_b_bytes <= budget_bytes:
            return d
    return aligned[-1]


def mab_forward(Q, K, params, *, num_heads, block_b=None,
                compute_dtype=jnp.float32, out_dtype=None, flatten_io=None,
                min_grid_steps=1, vmem_budget_bytes=40 * 2**20):
    B, Nq, dim_Q = Q.shape
    Bk, Nk, dim_K = K.shape
    dim_V = params["wq"].shape[1]
    assert Bk == B
    assert dim_V % num_heads == 0, "dim_V must be divisible by num_heads"

    out_dtype = jnp.float32 if out_dtype is None else out_dtype
    if flatten_io is None:
        # Lane-dense I/O only matters when a feature dim is not a multiple of
        # the 128-lane vreg width.
        flatten_io = (dim_V % 128 != 0) or (dim_Q % 128 != 0) or (dim_K % 128 != 0)

    # PyTorch MAB scales by sqrt(dim_V), not sqrt(head_dim).  Fold the scale into
    # the fused fc_k half (scores see Q.(scale*K); the residual keeps the
    # unscaled projected Q), and fuse fc_k / fc_v into one matmul.
    scale = 1.0 / math.sqrt(dim_V)
    w_kv = jnp.concatenate([params["wk"] * scale, params["wv"]], axis=1)
    b_kv = jnp.concatenate([params["bk"] * scale, params["bv"]], axis=1)

    cdt = compute_dtype
    q_in = Q.astype(cdt)
    k_in = K.astype(cdt)
    wq = params["wq"].astype(cdt)
    wkv = w_kv.astype(cdt)
    wo = params["wo"].astype(cdt)
    bq, bkv, bo = params["bq"], b_kv, params["bo"]       # biases stay f32

    # ---- VMEM-budget-driven batch-block size + explicit scoped-VMEM limit.
    in_sz = jnp.dtype(cdt).itemsize
    out_sz = jnp.dtype(out_dtype).itemsize
    io_per_b = 2 * ((Nq * dim_Q + Nk * dim_K) * in_sz + Nq * dim_V * out_sz)  # double-buffered blocks
    tmp_per_b = 4 * (3 * Nq * dim_V + 2 * Nk * dim_V + 2 * Nq * Nk)           # f32 in-kernel working set
    w_bytes = 2 * ((dim_Q + 2 * dim_K + dim_V) * dim_V * in_sz + 4 * dim_V * 4)
    if block_b is None:
        block_b = _choose_block_b(B, per_b_bytes=io_per_b + tmp_per_b,
                                  fixed_bytes=w_bytes,
                                  budget_bytes=vmem_budget_bytes,
                                  min_grid_steps=min_grid_steps)
    assert B % block_b == 0, "batch must be divisible by block_b"
    grid_b = B // block_b
    need = w_bytes + block_b * (io_per_b + tmp_per_b)
    # Cap at 56 MiB so the same setting is safe on v7x (64 MiB physical VMEM).
    vmem_limit = int(min(max(32 * 2**20, int(1.5 * need)), 56 * 2**20))

    kernel = functools.partial(mab_kernel, num_heads=num_heads, dim_V=dim_V,
                               nq=Nq, nk=Nk, dim_q=dim_Q, dim_k=dim_K)
    const2d = lambda b: (0, 0)

    def build(flat_io, single_buffer_weights):
        if flat_io:
            qa = q_in.reshape(B, Nq * dim_Q)
            ka = k_in.reshape(B, Nk * dim_K)
            q_spec = pl.BlockSpec((block_b, Nq * dim_Q), lambda b: (b, 0))
            k_spec = pl.BlockSpec((block_b, Nk * dim_K), lambda b: (b, 0))
            o_spec = pl.BlockSpec((block_b, Nq * dim_V), lambda b: (b, 0))
            o_shape = jax.ShapeDtypeStruct((B, Nq * dim_V), out_dtype)
            scratch = []                                  # register head combine
        else:
            qa, ka = q_in, k_in
            q_spec = pl.BlockSpec((block_b, Nq, dim_Q), lambda b: (b, 0, 0))
            k_spec = pl.BlockSpec((block_b, Nk, dim_K), lambda b: (b, 0, 0))
            o_spec = pl.BlockSpec((block_b, Nq, dim_V), lambda b: (b, 0, 0))
            o_shape = jax.ShapeDtypeStruct((B, Nq, dim_V), out_dtype)
            scratch = [pltpu.VMEM((block_b, Nq, dim_V), jnp.float32)]

        # Weight/bias blocks never change across the grid -> single buffer.
        wkw = dict(pipeline_mode=pl.Buffered(1)) if single_buffer_weights else {}
        w_specs = [
            pl.BlockSpec((dim_Q, dim_V), const2d, **wkw),
            pl.BlockSpec((1, dim_V), const2d, **wkw),
            pl.BlockSpec((dim_K, 2 * dim_V), const2d, **wkw),
            pl.BlockSpec((1, 2 * dim_V), const2d, **wkw),
            pl.BlockSpec((dim_V, dim_V), const2d, **wkw),
            pl.BlockSpec((1, dim_V), const2d, **wkw),
        ]

        return pl.pallas_call(
            kernel,
            out_shape=o_shape,
            grid_spec=pltpu.PrefetchScalarGridSpec(
                num_scalar_prefetch=0,
                grid=(grid_b,),
                in_specs=[q_spec, k_spec] + w_specs,
                out_specs=o_spec,
                scratch_shapes=scratch),
            compiler_params=pltpu.CompilerParams(
                dimension_semantics=("parallel",),
                vmem_limit_bytes=vmem_limit),
        )(qa, ka, wq, bq, wkv, bkv, wo, bo)

    try:
        out = build(flatten_io, True)
    except Exception:
        # Conservative fallback (previously validated configuration): 3-D blocks,
        # default double-buffered weights, VMEM-scratch head combine.
        out = build(False, False)

    return out.reshape(B, Nq, dim_V)


def mab_reference(Q, K, params, *, num_heads):
    """Pure-JAX mirror of the PyTorch forward for validation."""
    dim_V = params["wq"].shape[1]
    q = Q @ params["wq"] + params["bq"]
    k = K @ params["wk"] + params["bk"]
    v = K @ params["wv"] + params["bv"]
    ds = dim_V // num_heads
    B = Q.shape[0]
    split = lambda x: jnp.concatenate(
        [x[:, :, h * ds:(h + 1) * ds] for h in range(num_heads)], axis=0)
    Q_, K_, V_ = split(q), split(k), split(v)
    A = jax.nn.softmax(jnp.einsum("bqd,bkd->bqk", Q_, K_) / math.sqrt(dim_V), axis=2)
    O_ = Q_ + jnp.einsum("bqk,bkd->bqd", A, V_)
    O = jnp.concatenate([O_[h * B:(h + 1) * B] for h in range(num_heads)], axis=2)
    O = O + jax.nn.relu(O @ params["wo"] + params["bo"])
    return O


def init_params(key, dim_Q, dim_K, dim_V):
    """Deterministic Linear-like init; weights stored (in, out)."""
    ks = jax.random.split(key, 8)

    def linear(kw, kb, fan_in, fan_out):
        bound = 1.0 / math.sqrt(fan_in)
        w = jax.random.uniform(kw, (fan_in, fan_out), jnp.float32, -bound, bound)
        b = jax.random.uniform(kb, (1, fan_out), jnp.float32, -bound, bound)
        return w, b

    wq, bq = linear(ks[0], ks[1], dim_Q, dim_V)
    wk, bk = linear(ks[2], ks[3], dim_K, dim_V)
    wv, bv = linear(ks[4], ks[5], dim_K, dim_V)
    wo, bo = linear(ks[6], ks[7], dim_V, dim_V)
    return dict(wq=wq, bq=bq, wk=wk, bk=bk, wv=wv, bv=bv, wo=wo, bo=bo)


if __name__ == "__main__":
    # Small shapes: B=4, Nq=Nk=8, dim_Q=dim_K=dim_V=32, num_heads=4 (ln=False).
    # NOTE: these are sub-(8,128)-tile shapes for correctness checking only;
    # block_b / dtype / buffering should be re-tuned at production sizes.
    B, Nq, Nk = 4, 8, 8
    dim_Q, dim_K, dim_V, num_heads = 32, 32, 32, 4

    key = jax.random.PRNGKey(0)
    kq, kk, kp = jax.random.split(key, 3)
    Q = jax.random.normal(kq, (B, Nq, dim_Q), jnp.float32)
    K = jax.random.normal(kk, (B, Nk, dim_K), jnp.float32)
    params = init_params(kp, dim_Q, dim_K, dim_V)

    ref = mab_reference(Q, K, params, num_heads=num_heads)

    # f32 MXU path (tolerance accounts for the approx EUP reciprocal in softmax).
    out = jax.block_until_ready(mab_forward(Q, K, params, num_heads=num_heads))
    assert out.shape == (B, Nq, dim_V) and out.dtype == jnp.float32
    assert jnp.allclose(out, ref, atol=2e-3, rtol=2e-3), "f32 kernel mismatch vs reference"

    # bf16 MXU operands + bf16 HBM I/O (v6e/v7x path); f32 accumulation/softmax inside.
    out_bf16 = jax.block_until_ready(
        mab_forward(Q, K, params, num_heads=num_heads,
                    compute_dtype=jnp.bfloat16, out_dtype=jnp.bfloat16))
    assert out_bf16.dtype == jnp.bfloat16
    assert jnp.allclose(out_bf16.astype(jnp.float32), ref, atol=1e-1, rtol=1e-1), \
        "bf16 kernel mismatch vs reference"

    print("KERNEL_OK")
</pallas_src>

<mosaic_0001>
module attributes {stable_mosaic.version = 11 : i64} {
  func.func @mab_kernel(%arg0: i32, %arg1: memref<4x256xf32, #tpu.memory_space<vmem>>, %arg2: memref<4x256xf32, #tpu.memory_space<vmem>>, %arg3: memref<32x32xf32, #tpu.memory_space<vmem>>, %arg4: memref<1x32xf32, #tpu.memory_space<vmem>>, %arg5: memref<32x64xf32, #tpu.memory_space<vmem>>, %arg6: memref<1x64xf32, #tpu.memory_space<vmem>>, %arg7: memref<32x32xf32, #tpu.memory_space<vmem>>, %arg8: memref<1x32xf32, #tpu.memory_space<vmem>>, %arg9: memref<4x256xf32, #tpu.memory_space<vmem>>) attributes {dimension_semantics = [#tpu.dimension_semantics<parallel>], iteration_bounds = array<i64: 1>, scalar_prefetch = 0 : i64, scratch_operands = 0 : i64, tpu.core_type = #tpu.core_type<tc>, window_params = [{transform_indices = @transform_0, window_bounds = array<i64: 4, 256>}, {transform_indices = @transform_1, window_bounds = array<i64: 4, 256>}, {pipeline_mode = #tpu.pipeline_mode<synchronous>, transform_indices = @transform_2, window_bounds = array<i64: 32, 32>}, {pipeline_mode = #tpu.pipeline_mode<synchronous>, transform_indices = @transform_3, window_bounds = array<i64: 1, 32>}, {pipeline_mode = #tpu.pipeline_mode<synchronous>, transform_indices = @transform_4, window_bounds = array<i64: 32, 64>}, {pipeline_mode = #tpu.pipeline_mode<synchronous>, transform_indices = @transform_5, window_bounds = array<i64: 1, 64>}, {pipeline_mode = #tpu.pipeline_mode<synchronous>, transform_indices = @transform_6, window_bounds = array<i64: 32, 32>}, {pipeline_mode = #tpu.pipeline_mode<synchronous>, transform_indices = @transform_7, window_bounds = array<i64: 1, 32>}, {transform_indices = @transform_8, window_bounds = array<i64: 4, 256>}]} {
    %c0 = arith.constant 0 : index
    %c0_0 = arith.constant 0 : index
    %0 = vector.load %arg1[%c0, %c0_0] : memref<4x256xf32, #tpu.memory_space<vmem>>, vector<4x256xf32>
    %1 = vector.shape_cast %0 : vector<4x256xf32> to vector<32x32xf32>
    %c0_1 = arith.constant 0 : index
    %c0_2 = arith.constant 0 : index
    %2 = vector.load %arg2[%c0_1, %c0_2] : memref<4x256xf32, #tpu.memory_space<vmem>>, vector<4x256xf32>
    %3 = vector.shape_cast %2 : vector<4x256xf32> to vector<32x32xf32>
    %c0_3 = arith.constant 0 : index
    %c0_4 = arith.constant 0 : index
    %4 = vector.load %arg3[%c0_3, %c0_4] : memref<32x32xf32, #tpu.memory_space<vmem>>, vector<32x32xf32>
    %cst = arith.constant dense<0.000000e+00> : vector<32x32xf32>
    %5 = tpu.matmul %1, %4, %cst {dimension_numbers = #tpu.dot_dimension_numbers<[1], [0], [0], [1], [0, 0, 1, 1], [], []>} : vector<32x32xf32>, vector<32x32xf32>, vector<32x32xf32> -> vector<32x32xf32>
    %c0_5 = arith.constant 0 : index
    %c0_6 = arith.constant 0 : index
    %6 = vector.load %arg4[%c0_5, %c0_6] : memref<1x32xf32, #tpu.memory_space<vmem>>, vector<1x32xf32>
    %7 = vector.broadcast %6 : vector<1x32xf32> to vector<32x32xf32>
    %8 = arith.addf %5, %7 : vector<32x32xf32>
    %c0_7 = arith.constant 0 : index
    %c0_8 = arith.constant 0 : index
    %9 = vector.load %arg5[%c0_7, %c0_8] : memref<32x64xf32, #tpu.memory_space<vmem>>, vector<32x64xf32>
    %cst_9 = arith.constant dense<0.000000e+00> : vector<32x64xf32>
    %10 = tpu.matmul %3, %9, %cst_9 {dimension_numbers = #tpu.dot_dimension_numbers<[1], [0], [0], [1], [0, 0, 1, 1], [], []>} : vector<32x32xf32>, vector<32x64xf32>, vector<32x64xf32> -> vector<32x64xf32>
    %c0_10 = arith.constant 0 : index
    %c0_11 = arith.constant 0 : index
    %11 = vector.load %arg6[%c0_10, %c0_11] : memref<1x64xf32, #tpu.memory_space<vmem>>, vector<1x64xf32>
    %12 = vector.broadcast %11 : vector<1x64xf32> to vector<32x64xf32>
    %13 = arith.addf %10, %12 : vector<32x64xf32>
    %14 = vector.shape_cast %8 : vector<32x32xf32> to vector<4x8x32xf32>
    %15 = vector.extract_strided_slice %13 {offsets = [0, 0], sizes = [32, 32], strides = [1, 1]} : vector<32x64xf32> to vector<32x32xf32>
    %16 = vector.shape_cast %15 : vector<32x32xf32> to vector<4x8x32xf32>
    %17 = vector.extract_strided_slice %13 {offsets = [0, 32], sizes = [32, 32], strides = [1, 1]} : vector<32x64xf32> to vector<32x32xf32>
    %18 = vector.shape_cast %17 : vector<32x32xf32> to vector<4x8x32xf32>
    %19 = vector.extract_strided_slice %14 {offsets = [0, 0, 0], sizes = [4, 8, 8], strides = [1, 1, 1]} : vector<4x8x32xf32> to vector<4x8x8xf32>
    %20 = vector.extract_strided_slice %16 {offsets = [0, 0, 0], sizes = [4, 8, 8], strides = [1, 1, 1]} : vector<4x8x32xf32> to vector<4x8x8xf32>
    %21 = vector.extract_strided_slice %18 {offsets = [0, 0, 0], sizes = [4, 8, 8], strides = [1, 1, 1]} : vector<4x8x32xf32> to vector<4x8x8xf32>
    "tpu.trace_start"() <{level = 10 : i32, message = "bqd,bkd->bqk"}> : () -> ()
    %cst_12 = arith.constant dense<0.000000e+00> : vector<4x8x8xf32>
    %22 = tpu.matmul %19, %20, %cst_12 {dimension_numbers = #tpu.dot_dimension_numbers<[2], [2], [1], [1], [0, 0, 0, 1, 1, 1], [0], [0]>} : vector<4x8x8xf32>, vector<4x8x8xf32>, vector<4x8x8xf32> -> vector<4x8x8xf32>
    "tpu.trace_stop"() : () -> ()
    %cst_13 = arith.constant dense<0xFF800000> : vector<4x8xf32>
    %23 = vector.multi_reduction <maximumf>, %22, %cst_13 [2] : vector<4x8x8xf32> to vector<4x8xf32>
    %24 = vector.shape_cast %23 : vector<4x8xf32> to vector<4x8x1xf32>
    %25 = vector.broadcast %24 : vector<4x8x1xf32> to vector<4x8x8xf32>
    %26 = arith.subf %22, %25 : vector<4x8x8xf32>
    %27 = math.exp %26 : vector<4x8x8xf32>
    %cst_14 = arith.constant dense<0.000000e+00> : vector<4x8xf32>
    %28 = vector.multi_reduction <add>, %27, %cst_14 [2] : vector<4x8x8xf32> to vector<4x8xf32>
    %29 = vector.shape_cast %28 : vector<4x8xf32> to vector<4x8x1xf32>
    %30 = tpu.reciprocal %29 {approx = true} : vector<4x8x1xf32> -> vector<4x8x1xf32>
    %31 = vector.broadcast %30 : vector<4x8x1xf32> to vector<4x8x8xf32>
    %32 = arith.mulf %27, %31 : vector<4x8x8xf32>
    "tpu.trace_start"() <{level = 10 : i32, message = "bqk,bkd->bqd"}> : () -> ()
    %cst_15 = arith.constant dense<0.000000e+00> : vector<4x8x8xf32>
    %33 = tpu.matmul %32, %21, %cst_15 {dimension_numbers = #tpu.dot_dimension_numbers<[2], [1], [1], [2], [0, 0, 0, 1, 1, 2], [0], [0]>} : vector<4x8x8xf32>, vector<4x8x8xf32>, vector<4x8x8xf32> -> vector<4x8x8xf32>
    "tpu.trace_stop"() : () -> ()
    %34 = arith.addf %19, %33 : vector<4x8x8xf32>
    %35 = vector.extract_strided_slice %14 {offsets = [0, 0, 8], sizes = [4, 8, 8], strides = [1, 1, 1]} : vector<4x8x32xf32> to vector<4x8x8xf32>
    %36 = vector.extract_strided_slice %16 {offsets = [0, 0, 8], sizes = [4, 8, 8], strides = [1, 1, 1]} : vector<4x8x32xf32> to vector<4x8x8xf32>
    %37 = vector.extract_strided_slice %18 {offsets = [0, 0, 8], sizes = [4, 8, 8], strides = [1, 1, 1]} : vector<4x8x32xf32> to vector<4x8x8xf32>
    "tpu.trace_start"() <{level = 10 : i32, message = "bqd,bkd->bqk"}> : () -> ()
    %cst_16 = arith.constant dense<0.000000e+00> : vector<4x8x8xf32>
    %38 = tpu.matmul %35, %36, %cst_16 {dimension_numbers = #tpu.dot_dimension_numbers<[2], [2], [1], [1], [0, 0, 0, 1, 1, 1], [0], [0]>} : vector<4x8x8xf32>, vector<4x8x8xf32>, vector<4x8x8xf32> -> vector<4x8x8xf32>
    "tpu.trace_stop"() : () -> ()
    %cst_17 = arith.constant dense<0xFF800000> : vector<4x8xf32>
    %39 = vector.multi_reduction <maximumf>, %38, %cst_17 [2] : vector<4x8x8xf32> to vector<4x8xf32>
    %40 = vector.shape_cast %39 : vector<4x8xf32> to vector<4x8x1xf32>
    %41 = vector.broadcast %40 : vector<4x8x1xf32> to vector<4x8x8xf32>
    %42 = arith.subf %38, %41 : vector<4x8x8xf32>
    %43 = math.exp %42 : vector<4x8x8xf32>
    %cst_18 = arith.constant dense<0.000000e+00> : vector<4x8xf32>
    %44 = vector.multi_reduction <add>, %43, %cst_18 [2] : vector<4x8x8xf32> to vector<4x8xf32>
    %45 = vector.shape_cast %44 : vector<4x8xf32> to vector<4x8x1xf32>
    %46 = tpu.reciprocal %45 {approx = true} : vector<4x8x1xf32> -> vector<4x8x1xf32>
    %47 = vector.broadcast %46 : vector<4x8x1xf32> to vector<4x8x8xf32>
    %48 = arith.mulf %43, %47 : vector<4x8x8xf32>
    "tpu.trace_start"() <{level = 10 : i32, message = "bqk,bkd->bqd"}> : () -> ()
    %cst_19 = arith.constant dense<0.000000e+00> : vector<4x8x8xf32>
    %49 = tpu.matmul %48, %37, %cst_19 {dimension_numbers = #tpu.dot_dimension_numbers<[2], [1], [1], [2], [0, 0, 0, 1, 1, 2], [0], [0]>} : vector<4x8x8xf32>, vector<4x8x8xf32>, vector<4x8x8xf32> -> vector<4x8x8xf32>
    "tpu.trace_stop"() : () -> ()
    %50 = arith.addf %35, %49 : vector<4x8x8xf32>
    %51 = vector.extract_strided_slice %14 {offsets = [0, 0, 16], sizes = [4, 8, 8], strides = [1, 1, 1]} : vector<4x8x32xf32> to vector<4x8x8xf32>
    %52 = vector.extract_strided_slice %16 {offsets = [0, 0, 16], sizes = [4, 8, 8], strides = [1, 1, 1]} : vector<4x8x32xf32> to vector<4x8x8xf32>
    %53 = vector.extract_strided_slice %18 {offsets = [0, 0, 16], sizes = [4, 8, 8], strides = [1, 1, 1]} : vector<4x8x32xf32> to vector<4x8x8xf32>
    "tpu.trace_start"() <{level = 10 : i32, message = "bqd,bkd->bqk"}> : () -> ()
    %cst_20 = arith.constant dense<0.000000e+00> : vector<4x8x8xf32>
    %54 = tpu.matmul %51, %52, %cst_20 {dimension_numbers = #tpu.dot_dimension_numbers<[2], [2], [1], [1], [0, 0, 0, 1, 1, 1], [0], [0]>} : vector<4x8x8xf32>, vector<4x8x8xf32>, vector<4x8x8xf32> -> vector<4x8x8xf32>
    "tpu.trace_stop"() : () -> ()
    %cst_21 = arith.constant dense<0xFF800000> : vector<4x8xf32>
    %55 = vector.multi_reduction <maximumf>, %54, %cst_21 [2] : vector<4x8x8xf32> to vector<4x8xf32>
    %56 = vector.shape_cast %55 : vector<4x8xf32> to vector<4x8x1xf32>
    %57 = vector.broadcast %56 : vector<4x8x1xf32> to vector<4x8x8xf32>
    %58 = arith.subf %54, %57 : vector<4x8x8xf32>
    %59 = math.exp %58 : vector<4x8x8xf32>
    %cst_22 = arith.constant dense<0.000000e+00> : vector<4x8xf32>
    %60 = vector.multi_reduction <add>, %59, %cst_22 [2] : vector<4x8x8xf32> to vector<4x8xf32>
    %61 = vector.shape_cast %60 : vector<4x8xf32> to vector<4x8x1xf32>
    %62 = tpu.reciprocal %61 {approx = true} : vector<4x8x1xf32> -> vector<4x8x1xf32>
    %63 = vector.broadcast %62 : vector<4x8x1xf32> to vector<4x8x8xf32>
    %64 = arith.mulf %59, %63 : vector<4x8x8xf32>
    "tpu.trace_start"() <{level = 10 : i32, message = "bqk,bkd->bqd"}> : () -> ()
    %cst_23 = arith.constant dense<0.000000e+00> : vector<4x8x8xf32>
    %65 = tpu.matmul %64, %53, %cst_23 {dimension_numbers = #tpu.dot_dimension_numbers<[2], [1], [1], [2], [0, 0, 0, 1, 1, 2], [0], [0]>} : vector<4x8x8xf32>, vector<4x8x8xf32>, vector<4x8x8xf32> -> vector<4x8x8xf32>
    "tpu.trace_stop"() : () -> ()
    %66 = arith.addf %51, %65 : vector<4x8x8xf32>
    %67 = vector.extract_strided_slice %14 {offsets = [0, 0, 24], sizes = [4, 8, 8], strides = [1, 1, 1]} : vector<4x8x32xf32> to vector<4x8x8xf32>
    %68 = vector.extract_strided_slice %16 {offsets = [0, 0, 24], sizes = [4, 8, 8], strides = [1, 1, 1]} : vector<4x8x32xf32> to vector<4x8x8xf32>
    %69 = vector.extract_strided_slice %18 {offsets = [0, 0, 24], sizes = [4, 8, 8], strides = [1, 1, 1]} : vector<4x8x32xf32> to vector<4x8x8xf32>
    "tpu.trace_start"() <{level = 10 : i32, message = "bqd,bkd->bqk"}> : () -> ()
    %cst_24 = arith.constant dense<0.000000e+00> : vector<4x8x8xf32>
    %70 = tpu.matmul %67, %68, %cst_24 {dimension_numbers = #tpu.dot_dimension_numbers<[2], [2], [1], [1], [0, 0, 0, 1, 1, 1], [0], [0]>} : vector<4x8x8xf32>, vector<4x8x8xf32>, vector<4x8x8xf32> -> vector<4x8x8xf32>
    "tpu.trace_stop"() : () -> ()
    %cst_25 = arith.constant dense<0xFF800000> : vector<4x8xf32>
    %71 = vector.multi_reduction <maximumf>, %70, %cst_25 [2] : vector<4x8x8xf32> to vector<4x8xf32>
    %72 = vector.shape_cast %71 : vector<4x8xf32> to vector<4x8x1xf32>
    %73 = vector.broadcast %72 : vector<4x8x1xf32> to vector<4x8x8xf32>
    %74 = arith.subf %70, %73 : vector<4x8x8xf32>
    %75 = math.exp %74 : vector<4x8x8xf32>
    %cst_26 = arith.constant dense<0.000000e+00> : vector<4x8xf32>
    %76 = vector.multi_reduction <add>, %75, %cst_26 [2] : vector<4x8x8xf32> to vector<4x8xf32>
    %77 = vector.shape_cast %76 : vector<4x8xf32> to vector<4x8x1xf32>
    %78 = tpu.reciprocal %77 {approx = true} : vector<4x8x1xf32> -> vector<4x8x1xf32>
    %79 = vector.broadcast %78 : vector<4x8x1xf32> to vector<4x8x8xf32>
    %80 = arith.mulf %75, %79 : vector<4x8x8xf32>
    "tpu.trace_start"() <{level = 10 : i32, message = "bqk,bkd->bqd"}> : () -> ()
    %cst_27 = arith.constant dense<0.000000e+00> : vector<4x8x8xf32>
    %81 = tpu.matmul %80, %69, %cst_27 {dimension_numbers = #tpu.dot_dimension_numbers<[2], [1], [1], [2], [0, 0, 0, 1, 1, 2], [0], [0]>} : vector<4x8x8xf32>, vector<4x8x8xf32>, vector<4x8x8xf32> -> vector<4x8x8xf32>
    "tpu.trace_stop"() : () -> ()
    %82 = arith.addf %67, %81 : vector<4x8x8xf32>
    %83 = tpu.concatenate %34, %50, %66, %82 in 2 : vector<4x8x8xf32>, vector<4x8x8xf32>, vector<4x8x8xf32>, vector<4x8x8xf32> -> vector<4x8x32xf32>
    %84 = vector.shape_cast %83 : vector<4x8x32xf32> to vector<32x32xf32>
    %c0_28 = arith.constant 0 : index
    %c0_29 = arith.constant 0 : index
    %85 = vector.load %arg7[%c0_28, %c0_29] : memref<32x32xf32, #tpu.memory_space<vmem>>, vector<32x32xf32>
    %cst_30 = arith.constant dense<0.000000e+00> : vector<32x32xf32>
    %86 = tpu.matmul %84, %85, %cst_30 {dimension_numbers = #tpu.dot_dimension_numbers<[1], [0], [0], [1], [0, 0, 1, 1], [], []>} : vector<32x32xf32>, vector<32x32xf32>, vector<32x32xf32> -> vector<32x32xf32>
    %c0_31 = arith.constant 0 : index
    %c0_32 = arith.constant 0 : index
    %87 = vector.load %arg8[%c0_31, %c0_32] : memref<1x32xf32, #tpu.memory_space<vmem>>, vector<1x32xf32>
    %88 = vector.broadcast %87 : vector<1x32xf32> to vector<32x32xf32>
    %89 = arith.addf %86, %88 : vector<32x32xf32>
    %cst_33 = arith.constant 0.000000e+00 : f32
    %90 = vector.broadcast %cst_33 : f32 to vector<32x32xf32>
    %91 = arith.maximumf %89, %90 : vector<32x32xf32>
    %92 = arith.addf %84, %91 : vector<32x32xf32>
    %93 = vector.shape_cast %92 : vector<32x32xf32> to vector<4x256xf32>
    %c0_34 = arith.constant 0 : index
    %c0_35 = arith.constant 0 : index
    %94 = vector.load %arg9[%c0_34, %c0_35] : memref<4x256xf32, #tpu.memory_space<vmem>>, vector<4x256xf32>
    tpu.vector_store %arg9[%c0_34, %c0_35], %93 {strides = array<i32>} : memref<4x256xf32, #tpu.memory_space<vmem>>, vector<4x256xf32>,
    return
  }
  func.func @transform_0(%arg0: i32) -> (i32, i32) {
    %c0_i32 = arith.constant 0 : i32
    %c0_i32_0 = arith.constant 0 : i32
    return %arg0, %c0_i32 : i32, i32
  }
  func.func @transform_1(%arg0: i32) -> (i32, i32) {
    %c0_i32 = arith.constant 0 : i32
    %c0_i32_0 = arith.constant 0 : i32
    return %arg0, %c0_i32 : i32, i32
  }
  func.func @transform_2(%arg0: i32) -> (i32, i32) {
    %c0_i32 = arith.constant 0 : i32
    %c0_i32_0 = arith.constant 0 : i32
    %c0_i32_1 = arith.constant 0 : i32
    return %c0_i32, %c0_i32_0 : i32, i32
  }
  func.func @transform_3(%arg0: i32) -> (i32, i32) {
    %c0_i32 = arith.constant 0 : i32
    %c0_i32_0 = arith.constant 0 : i32
    %c0_i32_1 = arith.constant 0 : i32
    return %c0_i32, %c0_i32_0 : i32, i32
  }
  func.func @transform_4(%arg0: i32) -> (i32, i32) {
    %c0_i32 = arith.constant 0 : i32
    %c0_i32_0 = arith.constant 0 : i32
    %c0_i32_1 = arith.constant 0 : i32
    return %c0_i32, %c0_i32_0 : i32, i32
  }
  func.func @transform_5(%arg0: i32) -> (i32, i32) {
    %c0_i32 = arith.constant 0 : i32
    %c0_i32_0 = arith.constant 0 : i32
    %c0_i32_1 = arith.constant 0 : i32
    return %c0_i32, %c0_i32_0 : i32, i32
  }
  func.func @transform_6(%arg0: i32) -> (i32, i32) {
    %c0_i32 = arith.constant 0 : i32
    %c0_i32_0 = arith.constant 0 : i32
    %c0_i32_1 = arith.constant 0 : i32
    return %c0_i32, %c0_i32_0 : i32, i32
  }
  func.func @transform_7(%arg0: i32) -> (i32, i32) {
    %c0_i32 = arith.constant 0 : i32
    %c0_i32_0 = arith.constant 0 : i32
    %c0_i32_1 = arith.constant 0 : i32
    return %c0_i32, %c0_i32_0 : i32, i32
  }
  func.func @transform_8(%arg0: i32) -> (i32, i32) {
    %c0_i32 = arith.constant 0 : i32
    %c0_i32_0 = arith.constant 0 : i32
    return %arg0, %c0_i32 : i32, i32
  }
}

module attributes {stable_mosaic.version = 11 : i64} {
  func.func @mab_kernel(%arg0: i32, %arg1: memref<4x8x32xf32, #tpu.memory_space<vmem>>, %arg2: memref<4x8x32xf32, #tpu.memory_space<vmem>>, %arg3: memref<32x32xf32, #tpu.memory_space<vmem>>, %arg4: memref<1x32xf32, #tpu.memory_space<vmem>>, %arg5: memref<32x64xf32, #tpu.memory_space<vmem>>, %arg6: memref<1x64xf32, #tpu.memory_space<vmem>>, %arg7: memref<32x32xf32, #tpu.memory_space<vmem>>, %arg8: memref<1x32xf32, #tpu.memory_space<vmem>>, %arg9: memref<4x8x32xf32, #tpu.memory_space<vmem>>, %arg10: memref<4x8x32xf32, #tpu.memory_space<vmem>>) attributes {dimension_semantics = [#tpu.dimension_semantics<parallel>], iteration_bounds = array<i64: 1>, scalar_prefetch = 0 : i64, scratch_operands = 1 : i64, tpu.core_type = #tpu.core_type<tc>, window_params = [{transform_indices = @transform_0, window_bounds = array<i64: 4, 8, 32>}, {transform_indices = @transform_1, window_bounds = array<i64: 4, 8, 32>}, {pipeline_mode = #tpu.pipeline_mode<synchronous>, transform_indices = @transform_2, window_bounds = array<i64: 32, 32>}, {pipeline_mode = #tpu.pipeline_mode<synchronous>, transform_indices = @transform_3, window_bounds = array<i64: 1, 32>}, {pipeline_mode = #tpu.pipeline_mode<synchronous>, transform_indices = @transform_4, window_bounds = array<i64: 32, 64>}, {pipeline_mode = #tpu.pipeline_mode<synchronous>, transform_indices = @transform_5, window_bounds = array<i64: 1, 64>}, {pipeline_mode = #tpu.pipeline_mode<synchronous>, transform_indices = @transform_6, window_bounds = array<i64: 32, 32>}, {pipeline_mode = #tpu.pipeline_mode<synchronous>, transform_indices = @transform_7, window_bounds = array<i64: 1, 32>}, {transform_indices = @transform_8, window_bounds = array<i64: 4, 8, 32>}]} {
    %c0 = arith.constant 0 : index
    %c0_0 = arith.constant 0 : index
    %c0_1 = arith.constant 0 : index
    %0 = vector.load %arg1[%c0, %c0_0, %c0_1] : memref<4x8x32xf32, #tpu.memory_space<vmem>>, vector<4x8x32xf32>
    %1 = vector.shape_cast %0 : vector<4x8x32xf32> to vector<32x32xf32>
    %c0_2 = arith.constant 0 : index
    %c0_3 = arith.constant 0 : index
    %c0_4 = arith.constant 0 : index
    %2 = vector.load %arg2[%c0_2, %c0_3, %c0_4] : memref<4x8x32xf32, #tpu.memory_space<vmem>>, vector<4x8x32xf32>
    %3 = vector.shape_cast %2 : vector<4x8x32xf32> to vector<32x32xf32>
    %c0_5 = arith.constant 0 : index
    %c0_6 = arith.constant 0 : index
    %4 = vector.load %arg3[%c0_5, %c0_6] : memref<32x32xf32, #tpu.memory_space<vmem>>, vector<32x32xf32>
    %cst = arith.constant dense<0.000000e+00> : vector<32x32xf32>
    %5 = tpu.matmul %1, %4, %cst {dimension_numbers = #tpu.dot_dimension_numbers<[1], [0], [0], [1], [0, 0, 1, 1], [], []>} : vector<32x32xf32>, vector<32x32xf32>, vector<32x32xf32> -> vector<32x32xf32>
    %c0_7 = arith.constant 0 : index
    %c0_8 = arith.constant 0 : index
    %6 = vector.load %arg4[%c0_7, %c0_8] : memref<1x32xf32, #tpu.memory_space<vmem>>, vector<1x32xf32>
    %7 = vector.broadcast %6 : vector<1x32xf32> to vector<32x32xf32>
    %8 = arith.addf %5, %7 : vector<32x32xf32>
    %c0_9 = arith.constant 0 : index
    %c0_10 = arith.constant 0 : index
    %9 = vector.load %arg5[%c0_9, %c0_10] : memref<32x64xf32, #tpu.memory_space<vmem>>, vector<32x64xf32>
    %cst_11 = arith.constant dense<0.000000e+00> : vector<32x64xf32>
    %10 = tpu.matmul %3, %9, %cst_11 {dimension_numbers = #tpu.dot_dimension_numbers<[1], [0], [0], [1], [0, 0, 1, 1], [], []>} : vector<32x32xf32>, vector<32x64xf32>, vector<32x64xf32> -> vector<32x64xf32>
    %c0_12 = arith.constant 0 : index
    %c0_13 = arith.constant 0 : index
    %11 = vector.load %arg6[%c0_12, %c0_13] : memref<1x64xf32, #tpu.memory_space<vmem>>, vector<1x64xf32>
    %12 = vector.broadcast %11 : vector<1x64xf32> to vector<32x64xf32>
    %13 = arith.addf %10, %12 : vector<32x64xf32>
    %14 = vector.shape_cast %8 : vector<32x32xf32> to vector<4x8x32xf32>
    %15 = vector.extract_strided_slice %13 {offsets = [0, 0], sizes = [32, 32], strides = [1, 1]} : vector<32x64xf32> to vector<32x32xf32>
    %16 = vector.shape_cast %15 : vector<32x32xf32> to vector<4x8x32xf32>
    %17 = vector.extract_strided_slice %13 {offsets = [0, 32], sizes = [32, 32], strides = [1, 1]} : vector<32x64xf32> to vector<32x32xf32>
    %18 = vector.shape_cast %17 : vector<32x32xf32> to vector<4x8x32xf32>
    %19 = vector.extract_strided_slice %14 {offsets = [0, 0, 0], sizes = [4, 8, 8], strides = [1, 1, 1]} : vector<4x8x32xf32> to vector<4x8x8xf32>
    %20 = vector.extract_strided_slice %16 {offsets = [0, 0, 0], sizes = [4, 8, 8], strides = [1, 1, 1]} : vector<4x8x32xf32> to vector<4x8x8xf32>
    %21 = vector.extract_strided_slice %18 {offsets = [0, 0, 0], sizes = [4, 8, 8], strides = [1, 1, 1]} : vector<4x8x32xf32> to vector<4x8x8xf32>
    "tpu.trace_start"() <{level = 10 : i32, message = "bqd,bkd->bqk"}> : () -> ()
    %cst_14 = arith.constant dense<0.000000e+00> : vector<4x8x8xf32>
    %22 = tpu.matmul %19, %20, %cst_14 {dimension_numbers = #tpu.dot_dimension_numbers<[2], [2], [1], [1], [0, 0, 0, 1, 1, 1], [0], [0]>} : vector<4x8x8xf32>, vector<4x8x8xf32>, vector<4x8x8xf32> -> vector<4x8x8xf32>
    "tpu.trace_stop"() : () -> ()
    %cst_15 = arith.constant dense<0xFF800000> : vector<4x8xf32>
    %23 = vector.multi_reduction <maximumf>, %22, %cst_15 [2] : vector<4x8x8xf32> to vector<4x8xf32>
    %24 = vector.shape_cast %23 : vector<4x8xf32> to vector<4x8x1xf32>
    %25 = vector.broadcast %24 : vector<4x8x1xf32> to vector<4x8x8xf32>
    %26 = arith.subf %22, %25 : vector<4x8x8xf32>
    %27 = math.exp %26 : vector<4x8x8xf32>
    %cst_16 = arith.constant dense<0.000000e+00> : vector<4x8xf32>
    %28 = vector.multi_reduction <add>, %27, %cst_16 [2] : vector<4x8x8xf32> to vector<4x8xf32>
    %29 = vector.shape_cast %28 : vector<4x8xf32> to vector<4x8x1xf32>
    %30 = tpu.reciprocal %29 {approx = true} : vector<4x8x1xf32> -> vector<4x8x1xf32>
    %31 = vector.broadcast %30 : vector<4x8x1xf32> to vector<4x8x8xf32>
    %32 = arith.mulf %27, %31 : vector<4x8x8xf32>
    "tpu.trace_start"() <{level = 10 : i32, message = "bqk,bkd->bqd"}> : () -> ()
    %cst_17 = arith.constant dense<0.000000e+00> : vector<4x8x8xf32>
    %33 = tpu.matmul %32, %21, %cst_17 {dimension_numbers = #tpu.dot_dimension_numbers<[2], [1], [1], [2], [0, 0, 0, 1, 1, 2], [0], [0]>} : vector<4x8x8xf32>, vector<4x8x8xf32>, vector<4x8x8xf32> -> vector<4x8x8xf32>
    "tpu.trace_stop"() : () -> ()
    %34 = arith.addf %19, %33 : vector<4x8x8xf32>
    %c0_18 = arith.constant 0 : index
    %c0_19 = arith.constant 0 : index
    %c0_20 = arith.constant 0 : index
    %35 = vector.load %arg10[%c0_18, %c0_19, %c0_20] : memref<4x8x32xf32, #tpu.memory_space<vmem>>, vector<4x8x8xf32>
    tpu.vector_store %arg10[%c0_18, %c0_19, %c0_20], %34 {strides = array<i32>} : memref<4x8x32xf32, #tpu.memory_space<vmem>>, vector<4x8x8xf32>,
    %36 = vector.extract_strided_slice %14 {offsets = [0, 0, 8], sizes = [4, 8, 8], strides = [1, 1, 1]} : vector<4x8x32xf32> to vector<4x8x8xf32>
    %37 = vector.extract_strided_slice %16 {offsets = [0, 0, 8], sizes = [4, 8, 8], strides = [1, 1, 1]} : vector<4x8x32xf32> to vector<4x8x8xf32>
    %38 = vector.extract_strided_slice %18 {offsets = [0, 0, 8], sizes = [4, 8, 8], strides = [1, 1, 1]} : vector<4x8x32xf32> to vector<4x8x8xf32>
    "tpu.trace_start"() <{level = 10 : i32, message = "bqd,bkd->bqk"}> : () -> ()
    %cst_21 = arith.constant dense<0.000000e+00> : vector<4x8x8xf32>
    %39 = tpu.matmul %36, %37, %cst_21 {dimension_numbers = #tpu.dot_dimension_numbers<[2], [2], [1], [1], [0, 0, 0, 1, 1, 1], [0], [0]>} : vector<4x8x8xf32>, vector<4x8x8xf32>, vector<4x8x8xf32> -> vector<4x8x8xf32>
    "tpu.trace_stop"() : () -> ()
    %cst_22 = arith.constant dense<0xFF800000> : vector<4x8xf32>
    %40 = vector.multi_reduction <maximumf>, %39, %cst_22 [2] : vector<4x8x8xf32> to vector<4x8xf32>
    %41 = vector.shape_cast %40 : vector<4x8xf32> to vector<4x8x1xf32>
    %42 = vector.broadcast %41 : vector<4x8x1xf32> to vector<4x8x8xf32>
    %43 = arith.subf %39, %42 : vector<4x8x8xf32>
    %44 = math.exp %43 : vector<4x8x8xf32>
    %cst_23 = arith.constant dense<0.000000e+00> : vector<4x8xf32>
    %45 = vector.multi_reduction <add>, %44, %cst_23 [2] : vector<4x8x8xf32> to vector<4x8xf32>
    %46 = vector.shape_cast %45 : vector<4x8xf32> to vector<4x8x1xf32>
    %47 = tpu.reciprocal %46 {approx = true} : vector<4x8x1xf32> -> vector<4x8x1xf32>
    %48 = vector.broadcast %47 : vector<4x8x1xf32> to vector<4x8x8xf32>
    %49 = arith.mulf %44, %48 : vector<4x8x8xf32>
    "tpu.trace_start"() <{level = 10 : i32, message = "bqk,bkd->bqd"}> : () -> ()
    %cst_24 = arith.constant dense<0.000000e+00> : vector<4x8x8xf32>
    %50 = tpu.matmul %49, %38, %cst_24 {dimension_numbers = #tpu.dot_dimension_numbers<[2], [1], [1], [2], [0, 0, 0, 1, 1, 2], [0], [0]>} : vector<4x8x8xf32>, vector<4x8x8xf32>, vector<4x8x8xf32> -> vector<4x8x8xf32>
    "tpu.trace_stop"() : () -> ()
    %51 = arith.addf %36, %50 : vector<4x8x8xf32>
    %c0_25 = arith.constant 0 : index
    %c0_26 = arith.constant 0 : index
    %c8 = arith.constant 8 : index
    %52 = vector.load %arg10[%c0_25, %c0_26, %c8] : memref<4x8x32xf32, #tpu.memory_space<vmem>>, vector<4x8x8xf32>
    tpu.vector_store %arg10[%c0_25, %c0_26, %c8], %51 {strides = array<i32>} : memref<4x8x32xf32, #tpu.memory_space<vmem>>, vector<4x8x8xf32>,
    %53 = vector.extract_strided_slice %14 {offsets = [0, 0, 16], sizes = [4, 8, 8], strides = [1, 1, 1]} : vector<4x8x32xf32> to vector<4x8x8xf32>
    %54 = vector.extract_strided_slice %16 {offsets = [0, 0, 16], sizes = [4, 8, 8], strides = [1, 1, 1]} : vector<4x8x32xf32> to vector<4x8x8xf32>
    %55 = vector.extract_strided_slice %18 {offsets = [0, 0, 16], sizes = [4, 8, 8], strides = [1, 1, 1]} : vector<4x8x32xf32> to vector<4x8x8xf32>
    "tpu.trace_start"() <{level = 10 : i32, message = "bqd,bkd->bqk"}> : () -> ()
    %cst_27 = arith.constant dense<0.000000e+00> : vector<4x8x8xf32>
    %56 = tpu.matmul %53, %54, %cst_27 {dimension_numbers = #tpu.dot_dimension_numbers<[2], [2], [1], [1], [0, 0, 0, 1, 1, 1], [0], [0]>} : vector<4x8x8xf32>, vector<4x8x8xf32>, vector<4x8x8xf32> -> vector<4x8x8xf32>
    "tpu.trace_stop"() : () -> ()
    %cst_28 = arith.constant dense<0xFF800000> : vector<4x8xf32>
    %57 = vector.multi_reduction <maximumf>, %56, %cst_28 [2] : vector<4x8x8xf32> to vector<4x8xf32>
    %58 = vector.shape_cast %57 : vector<4x8xf32> to vector<4x8x1xf32>
    %59 = vector.broadcast %58 : vector<4x8x1xf32> to vector<4x8x8xf32>
    %60 = arith.subf %56, %59 : vector<4x8x8xf32>
    %61 = math.exp %60 : vector<4x8x8xf32>
    %cst_29 = arith.constant dense<0.000000e+00> : vector<4x8xf32>
    %62 = vector.multi_reduction <add>, %61, %cst_29 [2] : vector<4x8x8xf32> to vector<4x8xf32>
    %63 = vector.shape_cast %62 : vector<4x8xf32> to vector<4x8x1xf32>
    %64 = tpu.reciprocal %63 {approx = true} : vector<4x8x1xf32> -> vector<4x8x1xf32>
    %65 = vector.broadcast %64 : vector<4x8x1xf32> to vector<4x8x8xf32>
    %66 = arith.mulf %61, %65 : vector<4x8x8xf32>
    "tpu.trace_start"() <{level = 10 : i32, message = "bqk,bkd->bqd"}> : () -> ()
    %cst_30 = arith.constant dense<0.000000e+00> : vector<4x8x8xf32>
    %67 = tpu.matmul %66, %55, %cst_30 {dimension_numbers = #tpu.dot_dimension_numbers<[2], [1], [1], [2], [0, 0, 0, 1, 1, 2], [0], [0]>} : vector<4x8x8xf32>, vector<4x8x8xf32>, vector<4x8x8xf32> -> vector<4x8x8xf32>
    "tpu.trace_stop"() : () -> ()
    %68 = arith.addf %53, %67 : vector<4x8x8xf32>
    %c0_31 = arith.constant 0 : index
    %c0_32 = arith.constant 0 : index
    %c16 = arith.constant 16 : index
    %69 = vector.load %arg10[%c0_31, %c0_32, %c16] : memref<4x8x32xf32, #tpu.memory_space<vmem>>, vector<4x8x8xf32>
    tpu.vector_store %arg10[%c0_31, %c0_32, %c16], %68 {strides = array<i32>} : memref<4x8x32xf32, #tpu.memory_space<vmem>>, vector<4x8x8xf32>,
    %70 = vector.extract_strided_slice %14 {offsets = [0, 0, 24], sizes = [4, 8, 8], strides = [1, 1, 1]} : vector<4x8x32xf32> to vector<4x8x8xf32>
    %71 = vector.extract_strided_slice %16 {offsets = [0, 0, 24], sizes = [4, 8, 8], strides = [1, 1, 1]} : vector<4x8x32xf32> to vector<4x8x8xf32>
    %72 = vector.extract_strided_slice %18 {offsets = [0, 0, 24], sizes = [4, 8, 8], strides = [1, 1, 1]} : vector<4x8x32xf32> to vector<4x8x8xf32>
    "tpu.trace_start"() <{level = 10 : i32, message = "bqd,bkd->bqk"}> : () -> ()
    %cst_33 = arith.constant dense<0.000000e+00> : vector<4x8x8xf32>
    %73 = tpu.matmul %70, %71, %cst_33 {dimension_numbers = #tpu.dot_dimension_numbers<[2], [2], [1], [1], [0, 0, 0, 1, 1, 1], [0], [0]>} : vector<4x8x8xf32>, vector<4x8x8xf32>, vector<4x8x8xf32> -> vector<4x8x8xf32>
    "tpu.trace_stop"() : () -> ()
    %cst_34 = arith.constant dense<0xFF800000> : vector<4x8xf32>
    %74 = vector.multi_reduction <maximumf>, %73, %cst_34 [2] : vector<4x8x8xf32> to vector<4x8xf32>
    %75 = vector.shape_cast %74 : vector<4x8xf32> to vector<4x8x1xf32>
    %76 = vector.broadcast %75 : vector<4x8x1xf32> to vector<4x8x8xf32>
    %77 = arith.subf %73, %76 : vector<4x8x8xf32>
    %78 = math.exp %77 : vector<4x8x8xf32>
    %cst_35 = arith.constant dense<0.000000e+00> : vector<4x8xf32>
    %79 = vector.multi_reduction <add>, %78, %cst_35 [2] : vector<4x8x8xf32> to vector<4x8xf32>
    %80 = vector.shape_cast %79 : vector<4x8xf32> to vector<4x8x1xf32>
    %81 = tpu.reciprocal %80 {approx = true} : vector<4x8x1xf32> -> vector<4x8x1xf32>
    %82 = vector.broadcast %81 : vector<4x8x1xf32> to vector<4x8x8xf32>
    %83 = arith.mulf %78, %82 : vector<4x8x8xf32>
    "tpu.trace_start"() <{level = 10 : i32, message = "bqk,bkd->bqd"}> : () -> ()
    %cst_36 = arith.constant dense<0.000000e+00> : vector<4x8x8xf32>
    %84 = tpu.matmul %83, %72, %cst_36 {dimension_numbers = #tpu.dot_dimension_numbers<[2], [1], [1], [2], [0, 0, 0, 1, 1, 2], [0], [0]>} : vector<4x8x8xf32>, vector<4x8x8xf32>, vector<4x8x8xf32> -> vector<4x8x8xf32>
    "tpu.trace_stop"() : () -> ()
    %85 = arith.addf %70, %84 : vector<4x8x8xf32>
    %c0_37 = arith.constant 0 : index
    %c0_38 = arith.constant 0 : index
    %c24 = arith.constant 24 : index
    %86 = vector.load %arg10[%c0_37, %c0_38, %c24] : memref<4x8x32xf32, #tpu.memory_space<vmem>>, vector<4x8x8xf32>
    tpu.vector_store %arg10[%c0_37, %c0_38, %c24], %85 {strides = array<i32>} : memref<4x8x32xf32, #tpu.memory_space<vmem>>, vector<4x8x8xf32>,
    %c0_39 = arith.constant 0 : index
    %c0_40 = arith.constant 0 : index
    %c0_41 = arith.constant 0 : index
    %87 = vector.load %arg10[%c0_39, %c0_40, %c0_41] : memref<4x8x32xf32, #tpu.memory_space<vmem>>, vector<4x8x32xf32>
    %88 = vector.shape_cast %87 : vector<4x8x32xf32> to vector<32x32xf32>
    %c0_42 = arith.constant 0 : index
    %c0_43 = arith.constant 0 : index
    %89 = vector.load %arg7[%c0_42, %c0_43] : memref<32x32xf32, #tpu.memory_space<vmem>>, vector<32x32xf32>
    %cst_44 = arith.constant dense<0.000000e+00> : vector<32x32xf32>
    %90 = tpu.matmul %88, %89, %cst_44 {dimension_numbers = #tpu.dot_dimension_numbers<[1], [0], [0], [1], [0, 0, 1, 1], [], []>} : vector<32x32xf32>, vector<32x32xf32>, vector<32x32xf32> -> vector<32x32xf32>
    %c0_45 = arith.constant 0 : index
    %c0_46 = arith.constant 0 : index
    %91 = vector.load %arg8[%c0_45, %c0_46] : memref<1x32xf32, #tpu.memory_space<vmem>>, vector<1x32xf32>
    %92 = vector.broadcast %91 : vector<1x32xf32> to vector<32x32xf32>
    %93 = arith.addf %90, %92 : vector<32x32xf32>
    %cst_47 = arith.constant 0.000000e+00 : f32
    %94 = vector.broadcast %cst_47 : f32 to vector<32x32xf32>
    %95 = arith.maximumf %93, %94 : vector<32x32xf32>
    %96 = arith.addf %88, %95 : vector<32x32xf32>
    %97 = vector.shape_cast %96 : vector<32x32xf32> to vector<4x8x32xf32>
    %c0_48 = arith.constant 0 : index
    %c0_49 = arith.constant 0 : index
    %c0_50 = arith.constant 0 : index
    %98 = vector.load %arg9[%c0_48, %c0_49, %c0_50] : memref<4x8x32xf32, #tpu.memory_space<vmem>>, vector<4x8x32xf32>
    tpu.vector_store %arg9[%c0_48, %c0_49, %c0_50], %97 {strides = array<i32>} : memref<4x8x32xf32, #tpu.memory_space<vmem>>, vector<4x8x32xf32>,
    return
  }
  func.func @transform_0(%arg0: i32) -> (i32, i32, i32) {
    %c0_i32 = arith.constant 0 : i32
    %c0_i32_0 = arith.constant 0 : i32
    %c0_i32_1 = arith.constant 0 : i32
    return %arg0, %c0_i32, %c0_i32_0 : i32, i32, i32
  }
  func.func @transform_1(%arg0: i32) -> (i32, i32, i32) {
    %c0_i32 = arith.constant 0 : i32
    %c0_i32_0 = arith.constant 0 : i32
    %c0_i32_1 = arith.constant 0 : i32
    return %arg0, %c0_i32, %c0_i32_0 : i32, i32, i32
  }
  func.func @transform_2(%arg0: i32) -> (i32, i32) {
    %c0_i32 = arith.constant 0 : i32
    %c0_i32_0 = arith.constant 0 : i32
    %c0_i32_1 = arith.constant 0 : i32
    return %c0_i32, %c0_i32_0 : i32, i32
  }
  func.func @transform_3(%arg0: i32) -> (i32, i32) {
    %c0_i32 = arith.constant 0 : i32
    %c0_i32_0 = arith.constant 0 : i32
    %c0_i32_1 = arith.constant 0 : i32
    return %c0_i32, %c0_i32_0 : i32, i32
  }
  func.func @transform_4(%arg0: i32) -> (i32, i32) {
    %c0_i32 = arith.constant 0 : i32
    %c0_i32_0 = arith.constant 0 : i32
    %c0_i32_1 = arith.constant 0 : i32
    return %c0_i32, %c0_i32_0 : i32, i32
  }
  func.func @transform_5(%arg0: i32) -> (i32, i32) {
    %c0_i32 = arith.constant 0 : i32
    %c0_i32_0 = arith.constant 0 : i32
    %c0_i32_1 = arith.constant 0 : i32
    return %c0_i32, %c0_i32_0 : i32, i32
  }
  func.func @transform_6(%arg0: i32) -> (i32, i32) {
    %c0_i32 = arith.constant 0 : i32
    %c0_i32_0 = arith.constant 0 : i32
    %c0_i32_1 = arith.constant 0 : i32
    return %c0_i32, %c0_i32_0 : i32, i32
  }
  func.func @transform_7(%arg0: i32) -> (i32, i32) {
    %c0_i32 = arith.constant 0 : i32
    %c0_i32_0 = arith.constant 0 : i32
    %c0_i32_1 = arith.constant 0 : i32
    return %c0_i32, %c0_i32_0 : i32, i32
  }
  func.func @transform_8(%arg0: i32) -> (i32, i32, i32) {
    %c0_i32 = arith.constant 0 : i32
    %c0_i32_0 = arith.constant 0 : i32
    %c0_i32_1 = arith.constant 0 : i32
    return %arg0, %c0_i32, %c0_i32_0 : i32, i32, i32
  }
}

</mosaic_0001>

<bundles_post_ra>
// kernel: tpu_custom_call.1
= control target key start
LH: loop header
LB: loop body
LE: loop exit
PB: predicated region body
PF: predicated region fallthrough
CT: control target
= control target key end

     0   :  { %13 = vsyncpa [#allocation4], 0  ;;  %s2090_s0 = inlined_call_operand.hbm [shape: f32[4,8,32], index: 0, kind: input, shape index: {}]   ;;  %s2091_s1 = inlined_call_operand.hbm [shape: f32[4,8,32], index: 1, kind: input, shape index: {}]   ;;  %s2092_s2 = inlined_call_operand.hbm [shape: f32[32,32], index: 2, kind: input, shape index: {}]   ;;  %s2093_s3 = inlined_call_operand.vmem [shape: f32[1,32], index: 3, kind: input, shape index: {}]   ;;  %s2094_s4 = inlined_call_operand.hbm [shape: f32[32,64], index: 4, kind: input, shape index: {}]   ;;  %s2095_s5 = inlined_call_operand.vmem [shape: f32[1,64], index: 5, kind: input, shape index: {}]   ;;  %s2096_s6 = inlined_call_operand.hbm [shape: f32[32,32], index: 6, kind: input, shape index: {}]   ;;  %s2097_s7 = inlined_call_operand.vmem [shape: f32[1,32], index: 7, kind: input, shape index: {}]   ;;  %s2098_s8 = inlined_call_operand.hbm [shape: f32[4,8,32], index: 8, kind: output, shape index: {}]  }
   0x1   :  { %14 = vsyncpa [#allocation7], 0 }
   0x2   :  { %15 = vsyncpa [#allocation10], 0 }
   0x3   :  { %16 = vsyncpa [#allocation5], 0  ;;  %s34_s29 = sshll.u32 %s2091_s1, 4  ;;  %s1737_s30 = smov [#allocation6]   ;;  %s35_s29 = int_to_ptr.hbm [resolvable:$true] %s34_s29 }
   0x4   :  { %s36_s9 = sshll.u32 %s1737_s30, 4  ;;  %s62_s12 = sshll.u32 %s2094_s4, 4  ;;  %s37_s9 = int_to_ptr.vmem [resolvable:$true] %s36_s9  ;;  %s63_s12 = int_to_ptr.hbm [resolvable:$true] %s62_s12 }
   0x5   :  { %s1738_s13 = smov 128   ;;  %s1739_s14 = smov 8  }
   0x6   :  { %42 = dma.hbm_to_vmem [thread:$0]  %s35_s29, 512, %s37_s9, [#allocation7], %s1738_s13, %s1738_s13, %s1739_s14  }
   0x7   :  { %s1740_s15 = smov [#allocation9]   ;;  %s21_s1 = sshll.u32 %s2090_s0, 4  ;;  %s22_s1 = int_to_ptr.hbm [resolvable:$true] %s21_s1 }
   0x8   :  { %s64_s16 = sshll.u32 %s1740_s15, 4  ;;  %s47_s20 = sshll.u32 %s2092_s2, 4  ;;  %s65_s16 = int_to_ptr.vmem [resolvable:$true] %s64_s16  ;;  %s48_s20 = int_to_ptr.hbm [resolvable:$true] %s47_s20 }
   0x9   :  { %70 = dma.hbm_to_vmem [thread:$0]  %s63_s12, 512, %s65_s16, [#allocation10], %s1738_s13, %s1738_s13, %s1739_s14  }
   0xa   :  { %s1741_s21 = smov [#allocation3]   ;;  %s1742_s23 = smov [#allocation8]  }
   0xb   :  { %s23_s22 = sshll.u32 %s1741_s21, 4  ;;  %s49_s0 = sshll.u32 %s1742_s23, 4  ;;  %s24_s22 = int_to_ptr.vmem [resolvable:$true] %s23_s22  ;;  %s50_s0 = int_to_ptr.vmem [resolvable:$true] %s49_s0 }
   0xc   :  { %29 = dma.hbm_to_vmem [thread:$0]  %s22_s1, 512, %s24_s22, [#allocation4], %s1738_s13, %s1738_s13, %s1739_s14  }
   0xd   :  { %s77_s26 = sshll.u32 %s2096_s6, 4  ;;  %s1743_s2 = smov [#allocation11]   ;;  %s78_s26 = int_to_ptr.hbm [resolvable:$true] %s77_s26 }
   0xe   :  { %55 = dma.hbm_to_vmem [thread:$0]  %s48_s20, 512, %s50_s0, [#allocation7], %s1738_s13, %s1738_s13, %s1739_s14  }
   0xf   :  { %s79_s27 = sshll.u32 %s1743_s2, 4  ;;  %s80_s27 = int_to_ptr.vmem [resolvable:$true] %s79_s27 }
  0x10   :  { %85 = dma.hbm_to_vmem [thread:$0]  %s78_s26, 512, %s80_s27, [#allocation10], %s1738_s13, %s1738_s13, %s1739_s14  }
  0x11   :  { %1729 = dma.done.wait [#allocation4], 512  }
  0x12   :  { %1730 = vsyncadd [#allocation4], 4294966784 }
  0x13   :  { %1731 = dma.done.wait [#allocation7], 1024  }
  0x14   :  { %1732 = vsyncadd [#allocation7], 4294966272 }
  0x15   :  { %1733 = dma.done.wait [#allocation10], 1024  }
  0x16   :  { %1734 = vsyncadd [#allocation10], 4294966272  ;;  %v169_v0 = vld [vmem:[#allocation9 + $0x18] sm:$0xff]  ;;  %v168_v1 = vld [vmem:[#allocation9 + $0x10] sm:$0xff]  ;;  %vm124_vm0 = vcmask 261120   ;;  %vm215_vm1 = vcmask 64512  }
  0x17   :  { %v119_v2 = vld [vmem:[#allocation8 + $0x18] sm:$0xff]  ;;  %198 = vmatpush.msra.mxu1 %v169_v0  ;;  %v118_v3 = vld [vmem:[#allocation8 + $0x10] sm:$0xff]  ;;  %v167_v4 = vld [vmem:[#allocation9 + $0x8] sm:$0xff]  ;;  %s1744_s9 = smov 120   ;;  %s1747_s10 = smov 112   ;;  %vm756_vm2 = vcmask 130112  }
  0x18   :  { %149 = vmatpush.msra.mxu0 %v119_v2  ;;  %v117_v5 = vld [vmem:[#allocation8 + $0x8] sm:$0xff]  ;;  %v166_v6 = vld [vmem:[#allocation9] sm:$0xff]  ;;  %v114_v12 = vld [vmem:[#allocation6 + $0x10] sm:$0xff]  ;;  %s1748_s11 = smov 80   ;;  %s1749_s12 = smov 104   ;;  %vm1041_vm3 = vcmask 195712  }
  0x19   :  { %199 = vmatpush.msra.mxu1 %v168_v1  ;;  %v116_v7 = vld [vmem:[#allocation8] sm:$0xff]  ;;  %v113_v10 = vld [vmem:[#allocation6 + $0x8] sm:$0xff]  ;;  %v110_v13 = vld [vmem:[#allocation3 + $0x10] sm:$0xff]  ;;  %s1750_s15 = smov 72   ;;  %s1751_s16 = smov 16   ;;  %vm1326_vm4 = vcmask 261312  }
  0x1a   :  { %150 = vmatpush.msra.mxu0 %v118_v3  ;;  %v112_v8 = vld [vmem:[#allocation6] sm:$0xff]  ;;  %v109_v11 = vld [vmem:[#allocation3 + $0x8] sm:$0xff]  ;;  %v115_v14 = vld [vmem:[#allocation6 + $0x18] sm:$0xff]  ;;  %s1752_s17 = smov 24   ;;  %s1753_s4 = smov [#allocation12]  }
  0x1b   :  { %200 = vmatpush.msra.mxu1 %v167_v4  ;;  %v108_v9 = vld [vmem:[#allocation3] sm:$0xff]  ;;  %v111_v15 = vld [vmem:[#allocation3 + $0x18] sm:$0xff]  ;;  %s1400_s19 = sshll.u32 %s1753_s4, 4  ;;  %s1402_s21 = sshll.u32 %s2098_s8, 4  ;;  %s1401_s19 = int_to_ptr.vmem [resolvable:$true] %s1400_s19  ;;  %s1403_s21 = int_to_ptr.hbm [resolvable:$true] %s1402_s21 }
  0x1c   :  { %151 = vmatpush.msra.mxu0 %v117_v5  ;;  %v1518_v16 = vld [vmem:[%s2095_s5] ss:$0 sm:$0xff]  ;;  %s1746_s5 = smov 88  }
  0x1d   :  { %201 = vmatpush.msra.mxu1 %v166_v6  ;;  %v1519_v17 = vld [vmem:[%s2093_s3] ss:$0 sm:$0xff]  ;;  %s1745_s3 = smov 96  }
  0x1e   :  { %152 = vmatpush.msra.mxu0 %v116_v7  ;;  %1421 = vmatmul.msk.f32.vlgmr.msra.gmra.mxu1 %vm124_vm0, %v112_v8 }
  0x1f   :  { %1417 = vmatmul.msk.f32.vlgmr.msra.gmra.mxu0 %vm124_vm0, %v108_v9 }
  0x26   :  { %1422 = vmatmul.msk.f32.gmra.mxu1 %vm124_vm0, %v113_v10 }
  0x27   :  { %1418 = vmatmul.msk.f32.gmra.mxu0 %vm124_vm0, %v109_v11 }
  0x2e   :  { %1423 = vmatmul.msk.f32.gmra.mxu1 %vm124_vm0, %v114_v12 }
  0x2f   :  { %1419 = vmatmul.msk.f32.gmra.mxu0 %vm124_vm0, %v110_v13 }
  0x36   :  { %1424 = vmatmul.msk.f32.gmra.mxu1 %vm124_vm0, %v115_v14 }
  0x37   :  { %1420 = vmatmul.msk.f32.gmra.mxu0 %vm124_vm0, %v111_v15 }
  0x9b   :  { %v203_v18 = vpop.f32.mrf.mxu1 }
  0x9c   :  { %v154_v19 = vpop.f32.mrf.mxu0  ;;  %v1843_v20 = vadd.f32 %v1518_v16, %v203_v18 }
  0x9d   :  { %v1845_v21 = vadd.f32 %v1519_v17, %v154_v19 }
  0x9e   :  { %478 = vrot.lane.b32.xlu2 %v1843_v20, %s1744_s9  ;;  %1425 = vmatpush.xpose.msk.msrb.mxu0 %vm215_vm1, %v1843_v20 }
  0xa1   :  { %1426 = vmatmul.msk.f32.vlgmr.msrb.gmra.mxu0 %vm215_vm1, %v1845_v21 }
  0xa3   :  { %v206_v22 = vpop.f32.mrf.mxu1 }
  0xa4   :  { %v157_v23 = vpop.f32.mrf.mxu0  ;;  %v1853_v24 = vadd.f32 %v1518_v16, %v206_v22 }
  0xa5   :  { %v1855_v25 = vadd.f32 %v1519_v17, %v157_v23 }
  0xa6   :  { %1427 = vmatpush.xpose.msk.msrb.mxu1 %vm215_vm1, %v1853_v24  ;;  %506 = vrot.lane.b32.xlu2 %v1853_v24, %s1744_s9  ;;  %v1888_v42 = vpack.i.bf16 %v1853_v24, %v1843_v20 }
  0xa9   :  { %1428 = vmatmul.msk.f32.vlgmr.msrb.gmra.mxu1 %vm215_vm1, %v1855_v25 }
  0xab   :  { %v209_v26 = vpop.f32.mrf.mxu1 }
  0xac   :  { %v160_v27 = vpop.f32.mrf.mxu0  ;;  %v1863_v28 = vadd.f32 %v1518_v16, %v209_v26 }
  0xad   :  { %v1865_v29 = vadd.f32 %v1519_v17, %v160_v27 }
  0xae   :  { %1429 = vmatpush.xpose.msk.msra.mxu2 %vm215_vm1, %v1863_v28 }
  0xb1   :  { %1430 = vmatmul.msk.f32.vlgmr.msra.gmra.mxu2 %vm215_vm1, %v1865_v29 }
  0xb3   :  { %v212_v30 = vpop.f32.mrf.mxu1 }
  0xb4   :  { %v163_v31 = vpop.f32.mrf.mxu0  ;;  %v1871_v32 = vadd.f32 %v1518_v16, %v212_v30 }
  0xb5   :  { %v1873_v33 = vadd.f32 %v1519_v17, %v163_v31 }
  0xb6   :  { %1431 = vmatpush.xpose.msk.msra.mxu3 %vm215_vm1, %v1871_v32 }
  0xb9   :  { %1432 = vmatmul.msk.f32.vlgmr.msra.gmra.mxu3 %vm215_vm1, %v1873_v33 }
  0xf8   :  { %v479_v6 = vpop.permute.xlu2 %478 }
 0x100   :  { %v507_v7 = vpop.permute.xlu2 %506 }
 0x11e   :  { %v239_v34 = vpop.f32.mrf.mxu0 }
 0x11f   :  { %v320_v35 = vsel %vm215_vm1, %v239_v34, -inf }
 0x120   :  { %321 = vmax.xlane.f32.xlu0 %v320_v35 }
 0x126   :  { %v265_v36 = vpop.f32.mrf.mxu1 }
 0x127   :  { %v323_v37 = vsel %vm215_vm1, %v265_v36, -inf }
 0x128   :  { %324 = vmax.xlane.f32.xlu0 %v323_v37 }
 0x134   :  { %v291_v38 = vpop.f32.mrf.mxu2 }
 0x135   :  { %v326_v39 = vsel %vm215_vm1, %v291_v38, -inf }
 0x136   :  { %327 = vmax.xlane.f32.xlu1 %v326_v39 }
 0x13c   :  { %v317_v40 = vpop.f32.mrf.mxu3  ;;  %416 = vrot.lane.b32.xlu0 %v1863_v28, %s1745_s3 }
 0x13d   :  { %v329_v41 = vsel %vm215_vm1, %v317_v40, -inf }
 0x13e   :  { %330 = vmax.xlane.f32.xlu1 %v329_v41 }
 0x144   :  { %476 = vrot.lane.b32.xlu0 %v1845_v21, %s1744_s9 }
 0x157   :  { %1499 = vrot.lane.b32.xlu1 %v1888_v42, %s1745_s3 }
 0x15f   :  { %442 = vrot.lane.b32.xlu1 %v1871_v32, %s1745_s3 }
 0x167   :  { %504 = vrot.lane.b32.xlu1 %v1855_v25, %s1744_s9 }
 0x16f   :  { %562 = vrot.lane.b32.xlu1 %v1871_v32, %s1744_s9 }
 0x193   :  { %v322_v43 = vpop.xlane.xlu0 %321 }
 0x194   :  { %v332_v44 = vsub.f32 %v239_v34, %v322_v43 }
 0x196   :  { %v336_v45 = vmul.f32 1.442695, %v332_v44 }
 0x198   :  { %1521 = vpow2.f32 %v336_v45 }
 0x19b   :  { %v325_v46 = vpop.xlane.xlu0 %324 }
 0x19c   :  { %v333_v47 = vsub.f32 %v265_v36, %v325_v46 }
 0x19e   :  { %v1522_v48 = vpop.eup %1521  ;;  %v338_v49 = vmul.f32 1.442695, %v333_v47 }
 0x19f   :  { %v344_v50 = vsel %vm215_vm1, %v1522_v48, 0.0 }
 0x1a0   :  { %1523 = vpow2.f32 %v338_v49  ;;  %345 = vadd.xlane.f32.xlu2 %v344_v50 }
 0x1a6   :  { %v1524_v51 = vpop.eup %1523 }
 0x1a7   :  { %v347_v52 = vsel %vm215_vm1, %v1524_v51, 0.0 }
 0x1a8   :  { %348 = vadd.xlane.f32.xlu2 %v347_v52 }
 0x1a9   :  { %v328_v53 = vpop.xlane.xlu1 %327 }
 0x1aa   :  { %v334_v54 = vsub.f32 %v291_v38, %v328_v53 }
 0x1ac   :  { %v340_v55 = vmul.f32 1.442695, %v334_v54 }
 0x1ae   :  { %1525 = vpow2.f32 %v340_v55  ;;  %v417_v2 = vpop.permute.xlu0 %416 }
 0x1b1   :  { %v331_v56 = vpop.xlane.xlu1 %330 }
 0x1b2   :  { %v335_v57 = vsub.f32 %v317_v40, %v331_v56 }
 0x1b4   :  { %v1526_v58 = vpop.eup %1525  ;;  %v342_v59 = vmul.f32 1.442695, %v335_v57 }
 0x1b5   :  { %v350_v60 = vsel %vm215_vm1, %v1526_v58, 0.0 }
 0x1b6   :  { %1527 = vpow2.f32 %v342_v59  ;;  %351 = vadd.xlane.f32.xlu0 %v350_v60  ;;  %v477_v12 = vpop.permute.xlu0 %476 }
 0x1bc   :  { %v1528_v61 = vpop.eup %1527 }
 0x1bd   :  { %v353_v62 = vsel %vm215_vm1, %v1528_v61, 0.0 }
 0x1be   :  { %354 = vadd.xlane.f32.xlu2 %v353_v62 }
 0x1c9   :  { %v1500_v63 = vpop.permute.xlu1 %1499 }
 0x1ca   :  { %534 = vrot.lane.b32.xlu0 %v1863_v28, %s1744_s9  ;;  %v1501_v0 = vunpack.i.l.bf16 %v1500_v63  ;;  %v1502_v1 = vunpack.i.h.bf16 %v1500_v63 }
 0x1cc   :  { %385 = vmatpush.msrb.mxu2 %v1501_v0  ;;  %411 = vmatpush.msrb.mxu3 %v1502_v1 }
 0x1ce   :  { %437 = vmatpush.msra.mxu2 %v417_v2 }
 0x1d1   :  { %v443_v3 = vpop.permute.xlu1 %442 }
 0x1d2   :  { %463 = vmatpush.msra.mxu3 %v443_v3  ;;  %560 = vrot.lane.b32.xlu0 %v1873_v33, %s1744_s9 }
 0x1d6   :  { %532 = vrot.lane.b32.xlu2 %v1865_v29, %s1744_s9 }
 0x1d9   :  { %v505_v4 = vpop.permute.xlu1 %504 }
 0x1e1   :  { %v563_v5 = vpop.permute.xlu1 %562 }
 0x1e2   :  { %1443 = vmatpush.xpose.msk.msra.mxu1 %vm215_vm1, %v563_v5 }
 0x213   :  { %v346_v8 = vpop.xlane.xlu2 %345 }
 0x214   :  { %1529 = vrcp.f32 %v346_v8 }
 0x21a   :  { %v1530_v9 = vpop.eup %1529 }
 0x21b   :  { %v349_v10 = vpop.xlane.xlu2 %348  ;;  %v360_v11 = vmul.f32 %v1530_v9, %v1522_v48 }
 0x21c   :  { %1531 = vrcp.f32 %v349_v10 }
 0x21d   :  { %1433 = vmatmul.msk.f32.vlgmr.msrb.gmra.mxu2 %vm215_vm1, %v360_v11 }
 0x21e   :  { %1437 = vmatpush.xpose.msk.msrb.mxu2 %vm215_vm1, %v479_v6 }
 0x222   :  { %v1532_v13 = vpop.eup %1531 }
 0x223   :  { %v361_v14 = vmul.f32 %v1532_v13, %v1524_v51 }
 0x225   :  { %1434 = vmatmul.msk.f32.vlgmr.msrb.gmra.mxu3 %vm215_vm1, %v361_v14 }
 0x226   :  { %1439 = vmatpush.xpose.msk.msrb.mxu3 %vm215_vm1, %v507_v7 }
 0x229   :  { %v352_v15 = vpop.xlane.xlu0 %351 }
 0x22a   :  { %1533 = vrcp.f32 %v352_v15 }
 0x230   :  { %v1534_v16 = vpop.eup %1533 }
 0x231   :  { %v362_v17 = vmul.f32 %v1534_v16, %v1526_v58  ;;  %v355_v18 = vpop.xlane.xlu2 %354 }
 0x232   :  { %1535 = vrcp.f32 %v355_v18 }
 0x233   :  { %1435 = vmatmul.msk.f32.vlgmr.msra.gmra.mxu2 %vm215_vm1, %v362_v17 }
 0x238   :  { %v1536_v19 = vpop.eup %1535 }
 0x239   :  { %v363_v22 = vmul.f32 %v1536_v19, %v1528_v61  ;;  %v533_v26 = vpop.permute.xlu2 %532 }
 0x23b   :  { %1436 = vmatmul.msk.f32.vlgmr.msra.gmra.mxu3 %vm215_vm1, %v363_v22  ;;  %1438 = vmatmul.msk.f32.vlgmr.msrb.gmra.mxu2 %vm215_vm1, %v477_v12 }
 0x23c   :  { %v535_v23 = vpop.permute.xlu0 %534 }
 0x23d   :  { %1441 = vmatpush.xpose.msk.msra.mxu0 %vm215_vm1, %v535_v23 }
 0x240   :  { %1442 = vmatmul.msk.f32.vlgmr.msra.gmra.mxu0 %vm215_vm1, %v533_v26 }
 0x243   :  { %1440 = vmatmul.msk.f32.vlgmr.msrb.gmra.mxu3 %vm215_vm1, %v505_v4 }
 0x244   :  { %v561_v27 = vpop.permute.xlu0 %560 }
 0x245   :  { %1444 = vmatmul.msk.f32.vlgmr.msra.gmra.mxu1 %vm215_vm1, %v561_v27 }
 0x2a0   :  { %v387_v30 = vpop.f32.mrf.mxu2 }
 0x2a1   :  { %v468_v31 = vadd.f32 %v387_v30, %v1845_v21 }
 0x2a3   :  { %472 = vst.msk [vmem:[#allocation2] sm:$0xff] %vm215_vm1, %v468_v31 }
 0x2a8   :  { %v413_v34 = vpop.f32.mrf.mxu3 }
 0x2a9   :  { %v469_v35 = vadd.f32 %v413_v34, %v1855_v25 }
 0x2ab   :  { %473 = vst.msk [vmem:[#allocation2 + $0x8] sm:$0xff] %vm215_vm1, %v469_v35 }
 0x2b6   :  { %v439_v36 = vpop.f32.mrf.mxu2 }
 0x2b7   :  { %v470_v37 = vadd.f32 %v439_v36, %v1865_v29 }
 0x2b9   :  { %474 = vst.msk [vmem:[#allocation2 + $0x10] sm:$0xff] %vm215_vm1, %v470_v37 }
 0x2bd   :  { %v557_v38 = vpop.f32.mrf.mxu0 }
 0x2be   :  { %v465_v39 = vpop.f32.mrf.mxu3  ;;  %v501_v40 = vpop.f32.mrf.mxu2  ;;  %v594_v41 = vsel %vm215_vm1, %v557_v38, -inf }
 0x2bf   :  { %v471_v43 = vadd.f32 %v465_v39, %v1873_v33  ;;  %595 = vmax.xlane.f32.xlu0 %v594_v41  ;;  %v588_v44 = vsel %vm215_vm1, %v501_v40, -inf }
 0x2c0   :  { %589 = vmax.xlane.f32.xlu2 %v588_v44 }
 0x2c1   :  { %475 = vst.msk [vmem:[#allocation2 + $0x18] sm:$0xff] %vm215_vm1, %v471_v43 }
 0x2c2   :  { %v585_v45 = vpop.f32.mrf.mxu1 }
 0x2c3   :  { %v597_v48 = vsel %vm215_vm1, %v585_v45, -inf }
 0x2c6   :  { %v529_v46 = vpop.f32.mrf.mxu3 }
 0x2c7   :  { %v591_v47 = vsel %vm215_vm1, %v529_v46, -inf }
 0x2c8   :  { %592 = vmax.xlane.f32.xlu1 %v591_v47  ;;  %598 = vmax.xlane.f32.xlu2 %v597_v48 }
 0x2e0   :  { %1504 = vrot.lane.b32.xlu2 %v1888_v42, %s1746_s5 }
 0x2e8   :  { %791 = vrot.lane.b32.xlu2 %v1853_v24, %s1747_s10 }
 0x2f0   :  { %789 = vrot.lane.b32.xlu2 %v1855_v25, %s1747_s10 }
 0x2f8   :  { %819 = vrot.lane.b32.xlu2 %v1863_v28, %s1747_s10 }
 0x300   :  { %817 = vrot.lane.b32.xlu2 %v1865_v29, %s1747_s10 }
 0x308   :  { %845 = vrot.lane.b32.xlu2 %v1873_v33, %s1747_s10 }
 0x332   :  { %v596_v49 = vpop.xlane.xlu0 %595 }
 0x333   :  { %v602_v50 = vsub.f32 %v557_v38, %v596_v49  ;;  %v590_v51 = vpop.xlane.xlu2 %589 }
 0x334   :  { %v600_v52 = vsub.f32 %v501_v40, %v590_v51 }
 0x335   :  { %v608_v53 = vmul.f32 1.442695, %v602_v50 }
 0x336   :  { %v604_v54 = vmul.f32 1.442695, %v600_v52 }
 0x337   :  { %1537 = vpow2.f32 %v608_v53 }
 0x338   :  { %1539 = vpow2.f32 %v604_v54 }
 0x33b   :  { %v599_v55 = vpop.xlane.xlu2 %598  ;;  %v593_v2 = vpop.xlane.xlu1 %592 }
 0x33c   :  { %v603_v0 = vsub.f32 %v585_v45, %v599_v55  ;;  %v601_v3 = vsub.f32 %v529_v46, %v593_v2 }
 0x33d   :  { %v1538_v56 = vpop.eup %1537 }
 0x33e   :  { %v1540_v57 = vpop.eup %1539  ;;  %v618_v58 = vsel %vm215_vm1, %v1538_v56, 0.0  ;;  %v610_v1 = vmul.f32 1.442695, %v603_v0  ;;  %v606_v5 = vmul.f32 1.442695, %v601_v3 }
 0x33f   :  { %619 = vadd.xlane.f32.xlu0 %v618_v58  ;;  %v612_v59 = vsel %vm215_vm1, %v1540_v57, 0.0 }
 0x340   :  { %613 = vadd.xlane.f32.xlu1 %v612_v59  ;;  %1541 = vpow2.f32 %v610_v1 }
 0x341   :  { %1543 = vpow2.f32 %v606_v5 }
 0x343   :  { %v1505_v60 = vpop.permute.xlu2 %1504 }
 0x344   :  { %v1507_v61 = vunpack.i.h.bf16 %v1505_v60  ;;  %v1506_v62 = vunpack.i.l.bf16 %v1505_v60 }
 0x346   :  { %653 = vmatpush.msra.mxu2 %v1506_v62  ;;  %679 = vmatpush.msra.mxu3 %v1507_v61  ;;  %v1542_v4 = vpop.eup %1541 }
 0x347   :  { %v621_v6 = vsel %vm215_vm1, %v1542_v4, 0.0  ;;  %v1544_v7 = vpop.eup %1543 }
 0x348   :  { %v615_v8 = vsel %vm215_vm1, %v1544_v7, 0.0 }
 0x34b   :  { %v792_v63 = vpop.permute.xlu2 %791 }
 0x34c   :  { %1451 = vmatpush.xpose.msk.msrb.mxu3 %vm215_vm1, %v792_v63 }
 0x353   :  { %761 = vrot.lane.b32.xlu0 %v1845_v21, %s1747_s10  ;;  %v790_v13 = vpop.permute.xlu2 %789 }
 0x359   :  { %763 = vrot.lane.b32.xlu1 %v1843_v20, %s1747_s10 }
 0x35b   :  { %684 = vrot.lane.b32.xlu0 %v1863_v28, %s1746_s5  ;;  %v820_v17 = vpop.permute.xlu2 %819 }
 0x363   :  { %710 = vrot.lane.b32.xlu0 %v1871_v32, %s1746_s5  ;;  %v818_v23 = vpop.permute.xlu2 %817 }
 0x36b   :  { %v846_v37 = vpop.permute.xlu2 %845 }
 0x383   :  { %622 = vadd.xlane.f32.xlu1 %v621_v6 }
 0x38d   :  { %616 = vadd.xlane.f32.xlu0 %v615_v8 }
 0x3a1   :  { %847 = vrot.lane.b32.xlu0 %v1871_v32, %s1747_s10 }
 0x3b2   :  { %v620_v12 = vpop.xlane.xlu0 %619 }
 0x3b3   :  { %v614_v9 = vpop.xlane.xlu1 %613 }
 0x3b4   :  { %1545 = vrcp.f32 %v614_v9 }
 0x3b5   :  { %1547 = vrcp.f32 %v620_v12 }
 0x3ba   :  { %v1546_v10 = vpop.eup %1545 }
 0x3bb   :  { %v628_v11 = vmul.f32 %v1546_v10, %v1540_v57  ;;  %v1548_v15 = vpop.eup %1547 }
 0x3bc   :  { %v630_v18 = vmul.f32 %v1548_v15, %v1538_v56 }
 0x3bd   :  { %1445 = vmatmul.msk.f32.vlgmr.msra.gmra.mxu2 %vm215_vm1, %v628_v11 }
 0x3c5   :  { %v762_v14 = vpop.permute.xlu0 %761 }
 0x3cb   :  { %v764_v16 = vpop.permute.xlu1 %763 }
 0x3cc   :  { %1449 = vmatpush.xpose.msk.msrb.mxu2 %vm215_vm1, %v764_v16 }
 0x3cd   :  { %v685_v19 = vpop.permute.xlu0 %684 }
 0x3ce   :  { %705 = vmatpush.msrb.mxu0 %v685_v19 }
 0x3cf   :  { %1447 = vmatmul.msk.f32.vlgmr.msrb.gmra.mxu0 %vm215_vm1, %v630_v18  ;;  %1450 = vmatmul.msk.f32.vlgmr.msrb.gmra.mxu2 %vm215_vm1, %v762_v14 }
 0x3d0   :  { %1453 = vmatpush.xpose.msk.msra.mxu0 %vm215_vm1, %v820_v17 }
 0x3d5   :  { %v711_v22 = vpop.permute.xlu0 %710 }
 0x3d6   :  { %731 = vmatpush.msrb.mxu1 %v711_v22 }
 0x3d7   :  { %1454 = vmatmul.msk.f32.vlgmr.msra.gmra.mxu0 %vm215_vm1, %v818_v23 }
 0x3f6   :  { %v623_v26 = vpop.xlane.xlu1 %622 }
 0x3f7   :  { %1549 = vrcp.f32 %v623_v26 }
 0x3fd   :  { %v1550_v27 = vpop.eup %1549 }
 0x3fe   :  { %v631_v30 = vmul.f32 %v1550_v27, %v1542_v4 }
 0x400   :  { %1448 = vmatmul.msk.f32.vlgmr.msrb.gmra.mxu1 %vm215_vm1, %v631_v30  ;;  %v617_v31 = vpop.xlane.xlu0 %616 }
 0x401   :  { %1551 = vrcp.f32 %v617_v31 }
 0x407   :  { %v1552_v34 = vpop.eup %1551 }
 0x408   :  { %v629_v35 = vmul.f32 %v1552_v34, %v1544_v7 }
 0x40a   :  { %1446 = vmatmul.msk.f32.vlgmr.msra.gmra.mxu3 %vm215_vm1, %v629_v35 }
 0x412   :  { %1452 = vmatmul.msk.f32.vlgmr.msrb.gmra.mxu3 %vm215_vm1, %v790_v13 }
 0x413   :  { %v848_v36 = vpop.permute.xlu0 %847 }
 0x414   :  { %1455 = vmatpush.xpose.msk.msra.mxu1 %vm215_vm1, %v848_v36 }
 0x417   :  { %1456 = vmatmul.msk.f32.vlgmr.msra.gmra.mxu1 %vm215_vm1, %v846_v37 }
 0x440   :  { %v1968_v38 = vpop.f32.mrf.mxu2 }
 0x44c   :  { %v1970_v39 = vpop.f32.mrf.mxu0 }
 0x452   :  { %v786_v40 = vpop.f32.mrf.mxu2 }
 0x453   :  { %v873_v41 = vsel %vm215_vm1, %v786_v40, -inf }
 0x454   :  { %874 = vmax.xlane.f32.xlu0 %v873_v41  ;;  %v842_v43 = vpop.f32.mrf.mxu0 }
 0x455   :  { %v879_v44 = vsel %vm215_vm1, %v842_v43, -inf }
 0x456   :  { %880 = vmax.xlane.f32.xlu1 %v879_v44 }
 0x468   :  { %1509 = vrot.lane.b32.xlu0 %v1888_v42, %s1748_s11 }
 0x47d   :  { %v1975_v45 = vpop.f32.mrf.mxu1 }
 0x48d   :  { %v1977_v46 = vpop.f32.mrf.mxu3 }
 0x494   :  { %v870_v47 = vpop.f32.mrf.mxu1 }
 0x495   :  { %v814_v48 = vpop.f32.mrf.mxu3  ;;  %v882_v49 = vsel %vm215_vm1, %v870_v47, -inf }
 0x496   :  { %883 = vmax.xlane.f32.xlu1 %v882_v49  ;;  %v876_v50 = vsel %vm215_vm1, %v814_v48, -inf }
 0x497   :  { %877 = vmax.xlane.f32.xlu2 %v876_v50 }
 0x4af   :  { %1048 = vrot.lane.b32.xlu2 %v1843_v20, %s1749_s12 }
 0x4b7   :  { %969 = vrot.lane.b32.xlu2 %v1863_v28, %s1748_s11 }
 0x4bf   :  { %1074 = vrot.lane.b32.xlu2 %v1855_v25, %s1749_s12 }
 0x4c7   :  { %995 = vrot.lane.b32.xlu2 %v1871_v32, %s1748_s11  ;;  %v875_v53 = vpop.xlane.xlu0 %874 }
 0x4c8   :  { %v885_v3 = vsub.f32 %v786_v40, %v875_v53 }
 0x4c9   :  { %v881_v42 = vpop.xlane.xlu1 %880 }
 0x4ca   :  { %v887_v51 = vsub.f32 %v842_v43, %v881_v42  ;;  %v889_v5 = vmul.f32 1.442695, %v885_v3 }
 0x4cc   :  { %v893_v52 = vmul.f32 1.442695, %v887_v51 }
 0x4ce   :  { %1553 = vpow2.f32 %v893_v52 }
 0x4cf   :  { %1132 = vrot.lane.b32.xlu2 %v1871_v32, %s1749_s12 }
 0x4d4   :  { %v1554_v54 = vpop.eup %1553 }
 0x4d5   :  { %v903_v55 = vsel %vm215_vm1, %v1554_v54, 0.0 }
 0x4d6   :  { %904 = vadd.xlane.f32.xlu1 %v903_v55 }
 0x4da   :  { %v1510_v56 = vpop.permute.xlu0 %1509 }
 0x4db   :  { %v1512_v57 = vunpack.i.h.bf16 %v1510_v56  ;;  %v1511_v58 = vunpack.i.l.bf16 %v1510_v56 }
 0x4dd   :  { %938 = vmatpush.msra.mxu2 %v1511_v58  ;;  %964 = vmatpush.msra.mxu3 %v1512_v57 }
 0x4ef   :  { %1046 = vrot.lane.b32.xlu1 %v1845_v21, %s1749_s12 }
 0x4f7   :  { %1076 = vrot.lane.b32.xlu1 %v1853_v24, %s1749_s12 }
 0x4ff   :  { %1104 = vrot.lane.b32.xlu1 %v1863_v28, %s1749_s12 }
 0x507   :  { %1102 = vrot.lane.b32.xlu1 %v1865_v29, %s1749_s12 }
 0x509   :  { %v884_v59 = vpop.xlane.xlu1 %883 }
 0x50a   :  { %v888_v60 = vsub.f32 %v870_v47, %v884_v59  ;;  %v878_v61 = vpop.xlane.xlu2 %877 }
 0x50b   :  { %v886_v6 = vsub.f32 %v814_v48, %v878_v61 }
 0x50c   :  { %v895_v62 = vmul.f32 1.442695, %v888_v60 }
 0x50d   :  { %v891_v8 = vmul.f32 1.442695, %v886_v6 }
 0x50e   :  { %1555 = vpow2.f32 %v895_v62 }
 0x50f   :  { %1557 = vpow2.f32 %v889_v5 }
 0x510   :  { %1559 = vpow2.f32 %v891_v8 }
 0x512   :  { %v1049_v63 = vpop.permute.xlu2 %1048 }
 0x513   :  { %1461 = vmatpush.xpose.msk.msrb.mxu2 %vm215_vm1, %v1049_v63 }
 0x514   :  { %v1556_v0 = vpop.eup %1555 }
 0x515   :  { %v906_v1 = vsel %vm215_vm1, %v1556_v0, 0.0  ;;  %v1558_v9 = vpop.eup %1557 }
 0x516   :  { %907 = vadd.xlane.f32.xlu0 %v906_v1  ;;  %v897_v10 = vsel %vm215_vm1, %v1558_v9, 0.0  ;;  %v1560_v12 = vpop.eup %1559 }
 0x517   :  { %v900_v13 = vsel %vm215_vm1, %v1560_v12, 0.0 }
 0x51a   :  { %v970_v2 = vpop.permute.xlu2 %969 }
 0x51b   :  { %990 = vmatpush.msrb.mxu0 %v970_v2 }
 0x522   :  { %v1075_v4 = vpop.permute.xlu2 %1074 }
 0x52a   :  { %v996_v7 = vpop.permute.xlu2 %995 }
 0x52b   :  { %1016 = vmatpush.msrb.mxu1 %v996_v7 }
 0x531   :  { %898 = vadd.xlane.f32.xlu1 %v897_v10 }
 0x532   :  { %v1133_v11 = vpop.permute.xlu2 %1132 }
 0x533   :  { %1467 = vmatpush.xpose.msk.msra.mxu1 %vm215_vm1, %v1133_v11  ;;  %v1513_v11 = vpack.i.bf16 %v1863_v28, %v1843_v20 }
 0x539   :  { %901 = vadd.xlane.f32.xlu1 %v900_v13 }
 0x549   :  { %v905_v14 = vpop.xlane.xlu1 %904 }
 0x54a   :  { %1561 = vrcp.f32 %v905_v14 }
 0x550   :  { %v1562_v15 = vpop.eup %1561 }
 0x551   :  { %v915_v16 = vmul.f32 %v1562_v15, %v1554_v54 }
 0x552   :  { %1130 = vrot.lane.b32.xlu1 %v1873_v33, %s1749_s12 }
 0x553   :  { %1459 = vmatmul.msk.f32.vlgmr.msrb.gmra.mxu0 %vm215_vm1, %v915_v16 }
 0x561   :  { %v1047_v17 = vpop.permute.xlu1 %1046 }
 0x569   :  { %v1077_v18 = vpop.permute.xlu1 %1076 }
 0x56a   :  { %1463 = vmatpush.xpose.msk.msrb.mxu3 %vm215_vm1, %v1077_v18 }
 0x571   :  { %v1105_v19 = vpop.permute.xlu1 %1104 }
 0x572   :  { %1465 = vmatpush.xpose.msk.msra.mxu0 %vm215_vm1, %v1105_v19 }
 0x579   :  { %v1103_v22 = vpop.permute.xlu1 %1102 }
 0x57a   :  { %1466 = vmatmul.msk.f32.vlgmr.msra.gmra.mxu0 %vm215_vm1, %v1103_v22 }
 0x589   :  { %v908_v23 = vpop.xlane.xlu0 %907 }
 0x58a   :  { %1563 = vrcp.f32 %v908_v23 }
 0x590   :  { %v1564_v26 = vpop.eup %1563 }
 0x591   :  { %v916_v27 = vmul.f32 %v1564_v26, %v1556_v0 }
 0x593   :  { %1460 = vmatmul.msk.f32.vlgmr.msrb.gmra.mxu1 %vm215_vm1, %v916_v27 }
 0x5a4   :  { %v899_v30 = vpop.xlane.xlu1 %898 }
 0x5a5   :  { %1565 = vrcp.f32 %v899_v30 }
 0x5ab   :  { %v1566_v31 = vpop.eup %1565 }
 0x5ac   :  { %v913_v34 = vmul.f32 %v1566_v31, %v1558_v9  ;;  %v902_v35 = vpop.xlane.xlu1 %901 }
 0x5ad   :  { %1567 = vrcp.f32 %v902_v35 }
 0x5ae   :  { %1457 = vmatmul.msk.f32.vlgmr.msra.gmra.mxu2 %vm215_vm1, %v913_v34 }
 0x5b3   :  { %v1568_v36 = vpop.eup %1567 }
 0x5b4   :  { %v914_v37 = vmul.f32 %v1568_v36, %v1560_v12 }
 0x5b6   :  { %1458 = vmatmul.msk.f32.vlgmr.msra.gmra.mxu3 %vm215_vm1, %v914_v37  ;;  %1462 = vmatmul.msk.f32.vlgmr.msrb.gmra.mxu2 %vm215_vm1, %v1047_v17 }
 0x5be   :  { %1464 = vmatmul.msk.f32.vlgmr.msrb.gmra.mxu3 %vm215_vm1, %v1075_v4 }
 0x5c4   :  { %v1131_v40 = vpop.permute.xlu1 %1130 }
 0x5c5   :  { %1468 = vmatmul.msk.f32.vlgmr.msra.gmra.mxu1 %vm215_vm1, %v1131_v40 }
 0x5d0   :  { %v992_v41 = vpop.f32.mrf.mxu0 }
 0x5f7   :  { %v1127_v43 = vpop.f32.mrf.mxu0 }
 0x5f8   :  { %v1164_v44 = vsel %vm215_vm1, %v1127_v43, -inf }
 0x5f9   :  { %1165 = vmax.xlane.f32.xlu2 %v1164_v44 }
 0x610   :  { %v1018_v50 = vpop.f32.mrf.mxu1 }
 0x631   :  { %v940_v47 = vpop.f32.mrf.mxu2 }
 0x639   :  { %v2016_v48 = vpop.f32.mrf.mxu3  ;;  %v1071_v49 = vpop.f32.mrf.mxu2 }
 0x63a   :  { %v1158_v42 = vsel %vm215_vm1, %v1071_v49, -inf }
 0x63b   :  { %1159 = vmax.xlane.f32.xlu0 %v1158_v42 }
 0x641   :  { %v1099_v51 = vpop.f32.mrf.mxu3 }
 0x642   :  { %v1155_v52 = vpop.f32.mrf.mxu1  ;;  %v1161_v53 = vsel %vm215_vm1, %v1099_v51, -inf }
 0x643   :  { %1162 = vmax.xlane.f32.xlu1 %v1161_v53  ;;  %v1167_v54 = vsel %vm215_vm1, %v1155_v52, -inf  ;;  %v1337_v53 = vld [vmem:[#allocation11 + $0x10] sm:$0xff] }
 0x644   :  { %1168 = vmax.xlane.f32.xlu0 %v1167_v54  ;;  %v1336_v54 = vld [vmem:[#allocation11 + $0x8] sm:$0xff] }
 0x65c   :  { %1228 = vrot.lane.b32.xlu1 %v1853_v24, %s1750_s15 }
 0x664   :  { %1025 = vrot.lane.b32.xlu1 %v940_v47, %s1751_s16 }
 0x66c   :  { %v1166_v55 = vpop.xlane.xlu2 %1165 }
 0x66d   :  { %v1172_v56 = vsub.f32 %v1127_v43, %v1166_v55  ;;  %v1335_v55 = vld [vmem:[#allocation11] sm:$0xff] }
 0x66f   :  { %v1178_v57 = vmul.f32 1.442695, %v1172_v56 }
 0x671   :  { %1569 = vpow2.f32 %v1178_v57 }
 0x677   :  { %v1570_v58 = vpop.eup %1569 }
 0x678   :  { %v1188_v59 = vsel %vm215_vm1, %v1570_v58, 0.0 }
 0x679   :  { %1189 = vadd.xlane.f32.xlu0 %v1188_v59 }
 0x6ae   :  { %v1160_v60 = vpop.xlane.xlu0 %1159 }
 0x6af   :  { %v1170_v61 = vsub.f32 %v1071_v49, %v1160_v60 }
 0x6b1   :  { %v1174_v62 = vmul.f32 1.442695, %v1170_v61 }
 0x6b3   :  { %1571 = vpow2.f32 %v1174_v62 }
 0x6b6   :  { %v1163_v63 = vpop.xlane.xlu1 %1162 }
 0x6b7   :  { %v1171_v0 = vsub.f32 %v1099_v51, %v1163_v63  ;;  %v1169_v1 = vpop.xlane.xlu0 %1168 }
 0x6b8   :  { %v1173_v2 = vsub.f32 %v1155_v52, %v1169_v1  ;;  %v1338_v52 = vld [vmem:[#allocation11 + $0x18] sm:$0xff] }
 0x6b9   :  { %v1572_v24 = vpop.eup %1571  ;;  %v1176_v3 = vmul.f32 1.442695, %v1171_v0 }
 0x6ba   :  { %v1180_v4 = vmul.f32 1.442695, %v1173_v2  ;;  %v1182_v5 = vsel %vm215_vm1, %v1572_v24, 0.0 }
 0x6bb   :  { %1573 = vpow2.f32 %v1176_v3  ;;  %1183 = vadd.xlane.f32.xlu0 %v1182_v5 }
 0x6bc   :  { %1575 = vpow2.f32 %v1180_v4 }
 0x6c1   :  { %v1574_v6 = vpop.eup %1573 }
 0x6c2   :  { %v1576_v7 = vpop.eup %1575  ;;  %v1185_v8 = vsel %vm215_vm1, %v1574_v6, 0.0 }
 0x6c3   :  { %1186 = vadd.xlane.f32.xlu0 %v1185_v8  ;;  %v1191_v9 = vsel %vm215_vm1, %v1576_v7, 0.0 }
 0x6c4   :  { %1192 = vadd.xlane.f32.xlu2 %v1191_v9 }
 0x6ce   :  { %v1229_v10 = vpop.permute.xlu1 %1228 }
 0x6cf   :  { %1249 = vmatpush.msra.mxu3 %v1229_v10 }
 0x6d1   :  { %1477 = vmatpush.msrb.mxu3 %v1338_v52 }
 0x6d3   :  { %1478 = vmatpush.msrb.mxu3 %v1337_v53 }
 0x6d5   :  { %1479 = vmatpush.msrb.mxu3 %v1336_v54 }
 0x6d6   :  { %v1026_v27 = vpop.permute.xlu1 %1025 }
 0x6d7   :  { %1514 = vrot.lane.b32.xlu0 %v1513_v11, %s1750_s15  ;;  %v1037_v35 = vadd.f32 %v1026_v27, %v1845_v21  ;;  %1480 = vmatpush.msrb.mxu3 %v1335_v55 }
 0x6dc   :  { %1280 = vrot.lane.b32.xlu2 %v1871_v32, %s1750_s15 }
 0x6df   :  { %740 = vrot.lane.b32.xlu0 %v1968_v38, %s1739_s14 }
 0x6e4   :  { %1029 = vrot.lane.b32.xlu2 %v992_v41, %s1751_s16 }
 0x6e7   :  { %744 = vrot.lane.b32.xlu0 %v1970_v39, %s1739_s14 }
 0x6ec   :  { %742 = vrot.lane.b32.xlu2 %v1977_v46, %s1739_s14  ;;  %v1190_v20 = vpop.xlane.xlu0 %1189 }
 0x6ef   :  { %746 = vrot.lane.b32.xlu0 %v1975_v45, %s1739_s14 }
 0x6f4   :  { %1031 = vrot.lane.b32.xlu2 %v1018_v50, %s1751_s16 }
 0x72e   :  { %v1184_v28 = vpop.xlane.xlu0 %1183 }
 0x736   :  { %v1187_v12 = vpop.xlane.xlu0 %1186 }
 0x737   :  { %1577 = vrcp.f32 %v1187_v12  ;;  %v1193_v32 = vpop.xlane.xlu2 %1192 }
 0x738   :  { %1579 = vrcp.f32 %v1193_v32 }
 0x739   :  { %1581 = vrcp.f32 %v1190_v20 }
 0x73a   :  { %1583 = vrcp.f32 %v1184_v28 }
 0x73d   :  { %v1578_v38 = vpop.eup %1577 }
 0x73e   :  { %v1580_v13 = vpop.eup %1579  ;;  %v1199_v14 = vmul.f32 %v1578_v38, %v1574_v6 }
 0x73f   :  { %v1201_v15 = vmul.f32 %v1580_v13, %v1576_v7  ;;  %v1281_v16 = vpop.permute.xlu2 %1280  ;;  %v1582_v39 = vpop.eup %1581 }
 0x740   :  { %1470 = vmatmul.msk.f32.vlgmr.msra.gmra.mxu3 %vm215_vm1, %v1199_v14  ;;  %1301 = vmatpush.msrb.mxu1 %v1281_v16  ;;  %v1584_v46 = vpop.eup %1583  ;;  %v1200_v22 = vmul.f32 %v1582_v39, %v1570_v58 }
 0x741   :  { %1472 = vmatmul.msk.f32.vlgmr.msrb.gmra.mxu1 %vm215_vm1, %v1201_v15  ;;  %v1198_v23 = vmul.f32 %v1584_v46, %v1572_v24 }
 0x747   :  { %v1030_v45 = vpop.permute.xlu2 %1029 }
 0x748   :  { %v1039_v40 = vadd.f32 %v1030_v45, %v1865_v29 }
 0x749   :  { %v1515_v17 = vpop.permute.xlu0 %1514 }
 0x74a   :  { %v1517_v18 = vunpack.i.h.bf16 %v1515_v17  ;;  %v1516_v19 = vunpack.i.l.bf16 %v1515_v17 }
 0x74c   :  { %1223 = vmatpush.msra.mxu2 %v1516_v19  ;;  %1275 = vmatpush.msrb.mxu0 %v1517_v18 }
 0x74d   :  { %1469 = vmatmul.msk.f32.vlgmr.msra.gmra.mxu2 %vm215_vm1, %v1198_v23  ;;  %1471 = vmatmul.msk.f32.vlgmr.msrb.gmra.mxu0 %vm215_vm1, %v1200_v22 }
 0x74e   :  { %1367 = vmatpush.msrb.mxu2 %v1338_v52 }
 0x74f   :  { %v743_v26 = vpop.permute.xlu2 %742 }
 0x750   :  { %v753_v30 = vadd.f32 %v743_v26, %v1855_v25  ;;  %1368 = vmatpush.msrb.mxu2 %v1337_v53 }
 0x751   :  { %v741_v31 = vpop.permute.xlu0 %740 }
 0x752   :  { %758 = vst.msk [vmem:[#allocation2 + $0x8] sm:$0xff] %vm756_vm2, %v753_v30  ;;  %v752_v34 = vadd.f32 %v741_v31, %v1845_v21  ;;  %1369 = vmatpush.msrb.mxu2 %v1336_v54 }
 0x754   :  { %757 = vst.msk [vmem:[#allocation2] sm:$0xff] %vm756_vm2, %v752_v34  ;;  %1370 = vmatpush.msrb.mxu2 %v1335_v55 }
 0x755   :  { %1042 = vst.msk [vmem:[#allocation2] sm:$0xff] %vm1041_vm3, %v1037_v35 }
 0x757   :  { %v1032_v41 = vpop.permute.xlu2 %1031 }
 0x758   :  { %v1040_v47 = vadd.f32 %v1032_v41, %v1873_v33 }
 0x759   :  { %v745_v36 = vpop.permute.xlu0 %744 }
 0x75a   :  { %v754_v37 = vadd.f32 %v745_v36, %v1865_v29 }
 0x75c   :  { %759 = vst.msk [vmem:[#allocation2 + $0x10] sm:$0xff] %vm756_vm2, %v754_v37 }
 0x75d   :  { %1044 = vst.msk [vmem:[#allocation2 + $0x10] sm:$0xff] %vm1041_vm3, %v1039_v40 }
 0x761   :  { %v747_v43 = vpop.permute.xlu0 %746 }
 0x762   :  { %v755_v44 = vadd.f32 %v747_v43, %v1873_v33 }
 0x764   :  { %760 = vst.msk [vmem:[#allocation2 + $0x18] sm:$0xff] %vm756_vm2, %v755_v44 }
 0x765   :  { %1045 = vst.msk [vmem:[#allocation2 + $0x18] sm:$0xff] %vm1041_vm3, %v1040_v47 }
 0x7be   :  { %v1303_v51 = vpop.f32.mrf.mxu1 }
 0x7c3   :  { %v1251_v42 = vpop.f32.mrf.mxu3 }
 0x7ca   :  { %v1277_v49 = vpop.f32.mrf.mxu0 }
 0x7cb   :  { %1314 = vrot.lane.b32.xlu1 %v1277_v49, %s1752_s17 }
 0x7d0   :  { %v1225_v50 = vpop.f32.mrf.mxu2 }
 0x7d1   :  { %1310 = vrot.lane.b32.xlu0 %v1225_v50, %s1752_s17 }
 0x7d3   :  { %1027 = vrot.lane.b32.xlu1 %v2016_v48, %s1751_s16 }
 0x7d9   :  { %1312 = vrot.lane.b32.xlu0 %v1251_v42, %s1752_s17 }
 0x7db   :  { %1316 = vrot.lane.b32.xlu1 %v1303_v51, %s1752_s17 }
 0x83d   :  { %v1315_v56 = vpop.permute.xlu1 %1314 }
 0x83e   :  { %v1324_v48 = vadd.f32 %v1315_v56, %v1865_v29 }
 0x840   :  { %1329 = vst.msk [vmem:[#allocation2 + $0x10] sm:$0xff] %vm1326_vm4, %v1324_v48 }
 0x843   :  { %v1311_v57 = vpop.permute.xlu0 %1310 }
 0x844   :  { %v1322_v58 = vadd.f32 %v1311_v57, %v1845_v21 }
 0x845   :  { %v1028_v59 = vpop.permute.xlu1 %1027 }
 0x846   :  { %1327 = vst.msk [vmem:[#allocation2] sm:$0xff] %vm1326_vm4, %v1322_v58  ;;  %v1038_v60 = vadd.f32 %v1028_v59, %v1855_v25 }
 0x847   :  { %v1333_v61 = vld [vmem:[#allocation2 + $0x10] sm:$0xff] }
 0x848   :  { %1043 = vst.msk [vmem:[#allocation2 + $0x8] sm:$0xff] %vm1041_vm3, %v1038_v60  ;;  %1475 = vmatmul.msk.f32.vlgmr.msrb.gmra.mxu3 %vm124_vm0, %v1333_v61 }
 0x84b   :  { %v1313_v62 = vpop.permute.xlu0 %1312 }
 0x84c   :  { %v1323_v63 = vadd.f32 %v1313_v62, %v1855_v25  ;;  %v1520_v25 = vld [vmem:[%s2097_s7] ss:$0 sm:$0xff] }
 0x84d   :  { %v1317_v0 = vpop.permute.xlu1 %1316  ;;  %v1331_v29 = vld [vmem:[#allocation2] sm:$0xff] }
 0x84e   :  { %1328 = vst.msk [vmem:[#allocation2 + $0x8] sm:$0xff] %vm1326_vm4, %v1323_v63  ;;  %v1325_v1 = vadd.f32 %v1317_v0, %v1873_v33  ;;  %1473 = vmatmul.msk.f32.vlgmr.msrb.gmra.mxu2 %vm124_vm0, %v1331_v29 }
 0x850   :  { %1330 = vst.msk [vmem:[#allocation2 + $0x18] sm:$0xff] %vm1326_vm4, %v1325_v1 }
 0x855   :  { %v1332_v21 = vld [vmem:[#allocation2 + $0x8] sm:$0xff] }
 0x856   :  { %1474 = vmatmul.msk.f32.gmra.mxu2 %vm124_vm0, %v1332_v21 }
 0x857   :  { %v1334_v2 = vld [vmem:[#allocation2 + $0x18] sm:$0xff] }
 0x858   :  { %1476 = vmatmul.msk.f32.gmra.mxu3 %vm124_vm0, %v1334_v2 }
 0x8cb   :  { %v1378_v24 = vpop.f32.mrf.mxu3 }
 0x8cc   :  { %v1379_v3 = vadd.f32 %v1520_v25, %v1378_v24 }
 0x8ce   :  { %v1386_v4 = vmax.f32 %v1379_v3, 0.0 }
 0x8d0   :  { %v1390_v5 = vadd.f32 %v1386_v4, %v1333_v61 }
 0x8d1   :  { %v1372_v6 = vpop.f32.mrf.mxu2 }
 0x8d2   :  { %1394 = vst.msk [vmem:[#allocation12 + $0x10] sm:$0xff] %vm124_vm0, %v1390_v5  ;;  %v1373_v33 = vadd.f32 %v1520_v25, %v1372_v6 }
 0x8d4   :  { %v1384_v7 = vmax.f32 %v1373_v33, 0.0 }
 0x8d6   :  { %v1388_v8 = vadd.f32 %v1384_v7, %v1331_v29 }
 0x8d8   :  { %1392 = vst.msk [vmem:[#allocation12] sm:$0xff] %vm124_vm0, %v1388_v8 }
 0x8d9   :  { %v1375_v9 = vpop.f32.mrf.mxu2 }
 0x8da   :  { %v1376_v10 = vadd.f32 %v1520_v25, %v1375_v9 }
 0x8db   :  { %v1381_v11 = vpop.f32.mrf.mxu3 }
 0x8dc   :  { %v1385_v20 = vmax.f32 %v1376_v10, 0.0  ;;  %v1382_v28 = vadd.f32 %v1520_v25, %v1381_v11 }
 0x8de   :  { %v1389_v12 = vadd.f32 %v1385_v20, %v1332_v21  ;;  %v1387_v32 = vmax.f32 %v1382_v28, 0.0 }
 0x8e0   :  { %1393 = vst.msk [vmem:[#allocation12 + $0x8] sm:$0xff] %vm124_vm0, %v1389_v12  ;;  %v1391_v38 = vadd.f32 %v1387_v32, %v1334_v2 }
 0x8e2   :  { %1395 = vst.msk [vmem:[#allocation12 + $0x18] sm:$0xff] %vm124_vm0, %v1391_v38 }
 0x8e3   :  { %1408 = dma.vmem_to_hbm [thread:$0]  %s1401_s19, 512, %s1403_s21, [#allocation5], %s1738_s13, %s1738_s13, %s1739_s14  }
 0x8e4   :  { %1735 = dma.done.wait [#allocation5], 512  }
 0x8e5   :  { %1736 = vsyncadd [#allocation5], 4294966784 }
 0x8e6   :  { %1413 = vsyncpa [#allocation4], 1 }
 0x8e7   :  { %1414 = vsyncpa [#allocation7], 1 }
 0x8e8   :  { %1415 = vsyncpa [#allocation10], 1 }
 0x8e9   :  { %1416 = vsyncpa [#allocation5], 1 }

</bundles_post_ra>
